<compile_context>
chip_gen: v6e
topology: v6e:2x2x1
jax: 0.10.0
libtpu: 0.0.40
codegen_flags: <defaults>
</compile_context>

<pallas_src>
import jax
import jax.numpy as jnp
from jax.experimental import pallas as pl
from jax.experimental.pallas import tpu as pltpu


def _mask_predictor_kernel(x_ref, xt_ref, xb_ref, g_ref, w_ref, o_ref):
    # x_ref : (1, C, Ht, W)   input rows of this tile (stored dtype)
    # xt_ref: (1, C, hr, W)   thin block just above the tile (its last row = halo row)
    # xb_ref: (1, C, hr, W)   thin block just below the tile (its first row = halo row)
    # g_ref : (1, Ht, W) f32  Gumbel(0,1) noise for channel 1
    # w_ref : (C*9,) f32 SMEM; w_ref[c*9 + kh*3 + kw] == conv weight[1, c, kh, kw]
    # o_ref : (1, Ht, W) f32  hard one-hot mask along W
    C = x_ref.shape[1]
    Ht, W = o_ref.shape[1], o_ref.shape[2]
    hr = xt_ref.shape[2]

    h = pl.program_id(1)
    nh = pl.num_programs(1)
    top_scale = jnp.where(h == 0, 0.0, 1.0).astype(jnp.float32)       # zero halo at image top
    bot_scale = jnp.where(h == nh - 1, 0.0, 1.0).astype(jnp.float32)  # zero halo at image bottom

    zcol = jnp.zeros((Ht + 2, 1), jnp.float32)
    zacc = jnp.zeros((Ht, W), jnp.float32)

    def channel_taps(c, accs):
        a0, a1, a2 = accs
        mid = x_ref[0, c].astype(jnp.float32)                               # (Ht, W)
        top = xt_ref[0, c, hr - 1:hr, :].astype(jnp.float32) * top_scale    # (1, W)
        bot = xb_ref[0, c, 0:1, :].astype(jnp.float32) * bot_scale          # (1, W)
        plane = jnp.concatenate([top, mid, bot], axis=0)                    # (Ht+2, W)
        # kw shifts hoisted once per channel (kw=1 stays lane-aligned), reused for all 3 kh.
        shifted = (
            jnp.concatenate([zcol, plane[:, :W - 1]], axis=1),   # kw=0 -> x[:, w-1], 0 at w=0
            plane,                                               # kw=1 -> x[:, w]
            jnp.concatenate([plane[:, 1:], zcol], axis=1),       # kw=2 -> x[:, w+1], 0 at w=W-1
        )
        new_accs = []
        for kh, a in enumerate((a0, a1, a2)):        # 3 independent accumulator chains
            for kw in range(3):
                a = a + shifted[kw][kh:kh + Ht, :] * w_ref[c * 9 + kh * 3 + kw]
            new_accs.append(a)
        return tuple(new_accs)

    accs = (zacc, zacc, zacc)
    if C <= 8:                                       # small C: full unroll
        for c in range(C):
            accs = channel_taps(c, accs)
    else:                                            # large C: bound vreg live ranges
        accs = jax.lax.fori_loop(0, C, channel_taps, accs)

    s = accs[0] + accs[1] + accs[2] + g_ref[0]       # conv(channel 1) + Gumbel noise

    # ---- hard one-hot of argmax along W (first occurrence on ties) ----
    wi = jax.lax.broadcasted_iota(jnp.int32, (Ht, W), 1)
    m = jnp.max(s, axis=1, keepdims=True)                      # (Ht, 1)
    idx = jnp.min(jnp.where(s == m, wi, W), axis=1, keepdims=True)
    o_ref[0] = (wi == idx).astype(jnp.float32)


def _pick_row_tile(C, H, W, budget_bytes=6 * 1024 * 1024):
    """Largest Ht (multiple of 8 dividing H) whose double-buffered working set fits."""
    if H < 8 or H % 8:
        return H                                      # tiny / odd H: one tile, halos zeroed
    best = 8
    for ht in range(8, H + 1, 8):
        if H % ht:
            continue
        step_bytes = 2 * 4 * (C * ht * W + 2 * C * 8 * W + 2 * ht * W)   # 2x = double buffer
        if step_bytes <= budget_bytes:
            best = ht
    return best


def mask_predictor_forward(x_nchw, weight_oihw, bias, noise_key, meta, *, row_tile=None):
    """x_nchw: (N, C, H, W). weight_oihw: (2, C, 3, 3) OIHW. Returns (N, 1, H, W) hard mask."""
    del bias  # per-row constant along W cannot change the argmax -> inert for the hard mask
    N, C, H, W = x_nchw.shape

    # Keep the stored dtype in HBM (bf16 stays bf16); upcast happens in-kernel after the load.
    if x_nchw.dtype == jnp.float32 or x_nchw.dtype == jnp.bfloat16:
        x = x_nchw
    else:
        x = x_nchw.astype(jnp.float32)
    w_flat = weight_oihw[1].astype(jnp.float32).reshape(C * 9)     # channel-1 taps only

    # Gumbel noise for channel 1 only (channel 0 never reaches the returned mask).
    gumbel = jax.random.gumbel(noise_key, (N, H, W), jnp.float32)

    Ht = _pick_row_tile(C, H, W) if row_tile is None else row_tile
    if H % Ht or (Ht != H and Ht % 8):
        raise ValueError("row_tile must divide H and be a multiple of 8 (or equal H)")
    nH = H // Ht
    halo = 8 if H >= 8 else H

    if nH == 1:
        top_map = lambda n, h: (n, 0, 0, 0)
        bot_map = lambda n, h: (n, 0, 0, 0)
    else:
        htb = Ht // 8
        last_blk = H // 8 - 1
        top_map = lambda n, h: (n, 0, jnp.maximum(h * htb - 1, 0), 0)       # block above tile
        bot_map = lambda n, h: (n, 0, jnp.minimum(h * htb + htb, last_blk), 0)  # block below

    mask_nhw = pl.pallas_call(
        _mask_predictor_kernel,
        out_shape=jax.ShapeDtypeStruct((N, H, W), jnp.float32),
        grid=(N, nH),
        in_specs=[
            pl.BlockSpec((1, C, Ht, W), lambda n, h: (n, 0, h, 0)),     # tile rows
            pl.BlockSpec((1, C, halo, W), top_map),                     # 8-row halo block above
            pl.BlockSpec((1, C, halo, W), bot_map),                     # 8-row halo block below
            pl.BlockSpec((1, Ht, W), lambda n, h: (n, h, 0)),           # gumbel noise
            pl.BlockSpec(memory_space=pltpu.MemorySpace.SMEM),          # flat conv weights
        ],
        out_specs=pl.BlockSpec((1, Ht, W), lambda n, h: (n, h, 0)),
        compiler_params=pltpu.CompilerParams(
            dimension_semantics=("parallel", "parallel"),   # batch x row-tiles across TCs
            vmem_limit_bytes=32 * 1024 * 1024,
        ),
    )(x, x, x, gumbel, w_flat)

    mask = mask_nhw[:, None, :, :]      # (N, 1, H, W), NCHW like the PyTorch module
    meta['masks'].append(mask)          # side effect from the reference forward (glue;
                                        # not jit-safe, same as the torch module's dict use)
    return mask


if __name__ == "__main__":
    N, C, H, W = 2, 4, 16, 16

    key = jax.random.PRNGKey(0)
    kx, kw_key, kb, kn = jax.random.split(key, 4)

    # Deterministic parameter init (Conv2d(in_channels=C, out_channels=2, k=3) shapes).
    fan_in = C * 3 * 3
    bound = 1.0 / (fan_in ** 0.5)
    weight = jax.random.uniform(kw_key, (2, C, 3, 3), jnp.float32, -bound, bound)  # OIHW
    bias = jax.random.uniform(kb, (2,), jnp.float32, -bound, bound)
    x = jax.random.normal(kx, (N, C, H, W), jnp.float32)

    meta = {'masks': []}
    # row_tile=8 -> grid (N, 2): exercises the top/bottom image borders AND an interior halo.
    mask = mask_predictor_forward(x, weight, bias, kn, meta, row_tile=8)
    mask = jax.block_until_ready(mask)

    assert mask.shape == (N, 1, H, W)
    assert len(meta['masks']) == 1
    # each (n, h) row is a one-hot over W (channel-1 slice of the hard one-hot)
    assert bool(jnp.all(jnp.sum(mask, axis=-1) == 1.0))

    # Cross-check the selected positions against a pure-JAX conv + the identical Gumbel draw.
    logit1 = jax.lax.conv_general_dilated(
        x, weight[1:2], window_strides=(1, 1), padding="SAME",
        dimension_numbers=("NCHW", "OIHW", "NCHW"))[:, 0]          # (N, H, W); bias is inert
    scores = logit1 + jax.random.gumbel(kn, (N, H, W), jnp.float32)
    picked = jnp.sum(mask[:, 0] * scores, axis=-1)                 # score at the chosen w
    assert bool(jnp.all(picked >= jnp.max(scores, axis=-1) - 1e-4))

    print("KERNEL_OK")
</pallas_src>

<mosaic_0001>
module attributes {stable_mosaic.version = 11 : i64} {
  func.func @_mask_predictor_kernel(%arg0: i32, %arg1: i32, %arg2: memref<1x4x8x16xf32, #tpu.memory_space<vmem>>, %arg3: memref<1x4x8x16xf32, #tpu.memory_space<vmem>>, %arg4: memref<1x4x8x16xf32, #tpu.memory_space<vmem>>, %arg5: memref<1x8x16xf32, #tpu.memory_space<vmem>>, %arg6: memref<36xf32, #tpu.memory_space<smem>>, %arg7: memref<1x8x16xf32, #tpu.memory_space<vmem>>) attributes {dimension_semantics = [#tpu.dimension_semantics<parallel>, #tpu.dimension_semantics<parallel>], iteration_bounds = array<i64: 2, 2>, scalar_prefetch = 0 : i64, scratch_operands = 0 : i64, tpu.core_type = #tpu.core_type<tc>, window_params = [{transform_indices = @transform_0, window_bounds = array<i64: 1, 4, 8, 16>}, {transform_indices = @transform_1, window_bounds = array<i64: 1, 4, 8, 16>}, {transform_indices = @transform_2, window_bounds = array<i64: 1, 4, 8, 16>}, {transform_indices = @transform_3, window_bounds = array<i64: 1, 8, 16>}, {transform_indices = @transform_4, window_bounds = array<i64: 36>}, {transform_indices = @transform_5, window_bounds = array<i64: 1, 8, 16>}]} {
    %c0_i32 = arith.constant 0 : i32
    %0 = arith.cmpi eq, %arg1, %c0_i32 : i32
    %cst = arith.constant 0.000000e+00 : f32
    %cst_0 = arith.constant 1.000000e+00 : f32
    %1 = arith.select %0, %cst, %cst_0 : f32
    %c1_i32 = arith.constant 1 : i32
    %2 = arith.cmpi eq, %arg1, %c1_i32 : i32
    %cst_1 = arith.constant 0.000000e+00 : f32
    %cst_2 = arith.constant 1.000000e+00 : f32
    %3 = arith.select %2, %cst_1, %cst_2 : f32
    %cst_3 = arith.constant 0.000000e+00 : f32
    %4 = vector.broadcast %cst_3 : f32 to vector<10x1xf32>
    %cst_4 = arith.constant 0.000000e+00 : f32
    %5 = vector.broadcast %cst_4 : f32 to vector<8x16xf32>
    %c0 = arith.constant 0 : index
    %c0_5 = arith.constant 0 : index
    %c0_6 = arith.constant 0 : index
    %c0_7 = arith.constant 0 : index
    %6 = vector.load %arg2[%c0, %c0_5, %c0_6, %c0_7] : memref<1x4x8x16xf32, #tpu.memory_space<vmem>>, vector<1x1x8x16xf32>
    %7 = vector.shape_cast %6 : vector<1x1x8x16xf32> to vector<8x16xf32>
    %c0_8 = arith.constant 0 : index
    %c0_9 = arith.constant 0 : index
    %c7 = arith.constant 7 : index
    %c0_10 = arith.constant 0 : index
    %8 = vector.load %arg3[%c0_8, %c0_9, %c7, %c0_10] : memref<1x4x8x16xf32, #tpu.memory_space<vmem>>, vector<1x1x1x16xf32>
    %9 = vector.shape_cast %8 : vector<1x1x1x16xf32> to vector<1x16xf32>
    %10 = vector.broadcast %1 : f32 to vector<1x16xf32>
    %11 = arith.mulf %9, %10 : vector<1x16xf32>
    %c0_11 = arith.constant 0 : index
    %c0_12 = arith.constant 0 : index
    %c0_13 = arith.constant 0 : index
    %c0_14 = arith.constant 0 : index
    %12 = vector.load %arg4[%c0_11, %c0_12, %c0_13, %c0_14] : memref<1x4x8x16xf32, #tpu.memory_space<vmem>>, vector<1x1x1x16xf32>
    %13 = vector.shape_cast %12 : vector<1x1x1x16xf32> to vector<1x16xf32>
    %14 = vector.broadcast %3 : f32 to vector<1x16xf32>
    %15 = arith.mulf %13, %14 : vector<1x16xf32>
    %16 = tpu.concatenate %11, %7, %15 in 0 : vector<1x16xf32>, vector<8x16xf32>, vector<1x16xf32> -> vector<10x16xf32>
    %17 = vector.extract_strided_slice %16 {offsets = [0, 0], sizes = [10, 15], strides = [1, 1]} : vector<10x16xf32> to vector<10x15xf32>
    %18 = tpu.concatenate %4, %17 in 1 : vector<10x1xf32>, vector<10x15xf32> -> vector<10x16xf32>
    %19 = vector.extract_strided_slice %16 {offsets = [0, 1], sizes = [10, 15], strides = [1, 1]} : vector<10x16xf32> to vector<10x15xf32>
    %20 = tpu.concatenate %19, %4 in 1 : vector<10x15xf32>, vector<10x1xf32> -> vector<10x16xf32>
    %21 = vector.extract_strided_slice %18 {offsets = [0, 0], sizes = [8, 16], strides = [1, 1]} : vector<10x16xf32> to vector<8x16xf32>
    %c0_15 = arith.constant 0 : index
    %22 = memref.load %arg6[%c0_15] : memref<36xf32, #tpu.memory_space<smem>>
    %23 = vector.broadcast %22 : f32 to vector<8x16xf32>
    %24 = arith.mulf %21, %23 : vector<8x16xf32>
    %25 = arith.addf %5, %24 : vector<8x16xf32>
    %26 = vector.extract_strided_slice %16 {offsets = [0, 0], sizes = [8, 16], strides = [1, 1]} : vector<10x16xf32> to vector<8x16xf32>
    %c1 = arith.constant 1 : index
    %27 = memref.load %arg6[%c1] : memref<36xf32, #tpu.memory_space<smem>>
    %28 = vector.broadcast %27 : f32 to vector<8x16xf32>
    %29 = arith.mulf %26, %28 : vector<8x16xf32>
    %30 = arith.addf %25, %29 : vector<8x16xf32>
    %31 = vector.extract_strided_slice %20 {offsets = [0, 0], sizes = [8, 16], strides = [1, 1]} : vector<10x16xf32> to vector<8x16xf32>
    %c2 = arith.constant 2 : index
    %32 = memref.load %arg6[%c2] : memref<36xf32, #tpu.memory_space<smem>>
    %33 = vector.broadcast %32 : f32 to vector<8x16xf32>
    %34 = arith.mulf %31, %33 : vector<8x16xf32>
    %35 = arith.addf %30, %34 : vector<8x16xf32>
    %36 = vector.extract_strided_slice %18 {offsets = [1, 0], sizes = [8, 16], strides = [1, 1]} : vector<10x16xf32> to vector<8x16xf32>
    %c3 = arith.constant 3 : index
    %37 = memref.load %arg6[%c3] : memref<36xf32, #tpu.memory_space<smem>>
    %38 = vector.broadcast %37 : f32 to vector<8x16xf32>
    %39 = arith.mulf %36, %38 : vector<8x16xf32>
    %40 = arith.addf %5, %39 : vector<8x16xf32>
    %41 = vector.extract_strided_slice %16 {offsets = [1, 0], sizes = [8, 16], strides = [1, 1]} : vector<10x16xf32> to vector<8x16xf32>
    %c4 = arith.constant 4 : index
    %42 = memref.load %arg6[%c4] : memref<36xf32, #tpu.memory_space<smem>>
    %43 = vector.broadcast %42 : f32 to vector<8x16xf32>
    %44 = arith.mulf %41, %43 : vector<8x16xf32>
    %45 = arith.addf %40, %44 : vector<8x16xf32>
    %46 = vector.extract_strided_slice %20 {offsets = [1, 0], sizes = [8, 16], strides = [1, 1]} : vector<10x16xf32> to vector<8x16xf32>
    %c5 = arith.constant 5 : index
    %47 = memref.load %arg6[%c5] : memref<36xf32, #tpu.memory_space<smem>>
    %48 = vector.broadcast %47 : f32 to vector<8x16xf32>
    %49 = arith.mulf %46, %48 : vector<8x16xf32>
    %50 = arith.addf %45, %49 : vector<8x16xf32>
    %51 = vector.extract_strided_slice %18 {offsets = [2, 0], sizes = [8, 16], strides = [1, 1]} : vector<10x16xf32> to vector<8x16xf32>
    %c6 = arith.constant 6 : index
    %52 = memref.load %arg6[%c6] : memref<36xf32, #tpu.memory_space<smem>>
    %53 = vector.broadcast %52 : f32 to vector<8x16xf32>
    %54 = arith.mulf %51, %53 : vector<8x16xf32>
    %55 = arith.addf %5, %54 : vector<8x16xf32>
    %56 = vector.extract_strided_slice %16 {offsets = [2, 0], sizes = [8, 16], strides = [1, 1]} : vector<10x16xf32> to vector<8x16xf32>
    %c7_16 = arith.constant 7 : index
    %57 = memref.load %arg6[%c7_16] : memref<36xf32, #tpu.memory_space<smem>>
    %58 = vector.broadcast %57 : f32 to vector<8x16xf32>
    %59 = arith.mulf %56, %58 : vector<8x16xf32>
    %60 = arith.addf %55, %59 : vector<8x16xf32>
    %61 = vector.extract_strided_slice %20 {offsets = [2, 0], sizes = [8, 16], strides = [1, 1]} : vector<10x16xf32> to vector<8x16xf32>
    %c8 = arith.constant 8 : index
    %62 = memref.load %arg6[%c8] : memref<36xf32, #tpu.memory_space<smem>>
    %63 = vector.broadcast %62 : f32 to vector<8x16xf32>
    %64 = arith.mulf %61, %63 : vector<8x16xf32>
    %65 = arith.addf %60, %64 : vector<8x16xf32>
    %c0_17 = arith.constant 0 : index
    %c1_18 = arith.constant 1 : index
    %c0_19 = arith.constant 0 : index
    %c0_20 = arith.constant 0 : index
    %66 = vector.load %arg2[%c0_17, %c1_18, %c0_19, %c0_20] : memref<1x4x8x16xf32, #tpu.memory_space<vmem>>, vector<1x1x8x16xf32>
    %67 = vector.shape_cast %66 : vector<1x1x8x16xf32> to vector<8x16xf32>
    %c0_21 = arith.constant 0 : index
    %c1_22 = arith.constant 1 : index
    %c7_23 = arith.constant 7 : index
    %c0_24 = arith.constant 0 : index
    %68 = vector.load %arg3[%c0_21, %c1_22, %c7_23, %c0_24] : memref<1x4x8x16xf32, #tpu.memory_space<vmem>>, vector<1x1x1x16xf32>
    %69 = vector.shape_cast %68 : vector<1x1x1x16xf32> to vector<1x16xf32>
    %70 = vector.broadcast %1 : f32 to vector<1x16xf32>
    %71 = arith.mulf %69, %70 : vector<1x16xf32>
    %c0_25 = arith.constant 0 : index
    %c1_26 = arith.constant 1 : index
    %c0_27 = arith.constant 0 : index
    %c0_28 = arith.constant 0 : index
    %72 = vector.load %arg4[%c0_25, %c1_26, %c0_27, %c0_28] : memref<1x4x8x16xf32, #tpu.memory_space<vmem>>, vector<1x1x1x16xf32>
    %73 = vector.shape_cast %72 : vector<1x1x1x16xf32> to vector<1x16xf32>
    %74 = vector.broadcast %3 : f32 to vector<1x16xf32>
    %75 = arith.mulf %73, %74 : vector<1x16xf32>
    %76 = tpu.concatenate %71, %67, %75 in 0 : vector<1x16xf32>, vector<8x16xf32>, vector<1x16xf32> -> vector<10x16xf32>
    %77 = vector.extract_strided_slice %76 {offsets = [0, 0], sizes = [10, 15], strides = [1, 1]} : vector<10x16xf32> to vector<10x15xf32>
    %78 = tpu.concatenate %4, %77 in 1 : vector<10x1xf32>, vector<10x15xf32> -> vector<10x16xf32>
    %79 = vector.extract_strided_slice %76 {offsets = [0, 1], sizes = [10, 15], strides = [1, 1]} : vector<10x16xf32> to vector<10x15xf32>
    %80 = tpu.concatenate %79, %4 in 1 : vector<10x15xf32>, vector<10x1xf32> -> vector<10x16xf32>
    %81 = vector.extract_strided_slice %78 {offsets = [0, 0], sizes = [8, 16], strides = [1, 1]} : vector<10x16xf32> to vector<8x16xf32>
    %c9 = arith.constant 9 : index
    %82 = memref.load %arg6[%c9] : memref<36xf32, #tpu.memory_space<smem>>
    %83 = vector.broadcast %82 : f32 to vector<8x16xf32>
    %84 = arith.mulf %81, %83 : vector<8x16xf32>
    %85 = arith.addf %35, %84 : vector<8x16xf32>
    %86 = vector.extract_strided_slice %76 {offsets = [0, 0], sizes = [8, 16], strides = [1, 1]} : vector<10x16xf32> to vector<8x16xf32>
    %c10 = arith.constant 10 : index
    %87 = memref.load %arg6[%c10] : memref<36xf32, #tpu.memory_space<smem>>
    %88 = vector.broadcast %87 : f32 to vector<8x16xf32>
    %89 = arith.mulf %86, %88 : vector<8x16xf32>
    %90 = arith.addf %85, %89 : vector<8x16xf32>
    %91 = vector.extract_strided_slice %80 {offsets = [0, 0], sizes = [8, 16], strides = [1, 1]} : vector<10x16xf32> to vector<8x16xf32>
    %c11 = arith.constant 11 : index
    %92 = memref.load %arg6[%c11] : memref<36xf32, #tpu.memory_space<smem>>
    %93 = vector.broadcast %92 : f32 to vector<8x16xf32>
    %94 = arith.mulf %91, %93 : vector<8x16xf32>
    %95 = arith.addf %90, %94 : vector<8x16xf32>
    %96 = vector.extract_strided_slice %78 {offsets = [1, 0], sizes = [8, 16], strides = [1, 1]} : vector<10x16xf32> to vector<8x16xf32>
    %c12 = arith.constant 12 : index
    %97 = memref.load %arg6[%c12] : memref<36xf32, #tpu.memory_space<smem>>
    %98 = vector.broadcast %97 : f32 to vector<8x16xf32>
    %99 = arith.mulf %96, %98 : vector<8x16xf32>
    %100 = arith.addf %50, %99 : vector<8x16xf32>
    %101 = vector.extract_strided_slice %76 {offsets = [1, 0], sizes = [8, 16], strides = [1, 1]} : vector<10x16xf32> to vector<8x16xf32>
    %c13 = arith.constant 13 : index
    %102 = memref.load %arg6[%c13] : memref<36xf32, #tpu.memory_space<smem>>
    %103 = vector.broadcast %102 : f32 to vector<8x16xf32>
    %104 = arith.mulf %101, %103 : vector<8x16xf32>
    %105 = arith.addf %100, %104 : vector<8x16xf32>
    %106 = vector.extract_strided_slice %80 {offsets = [1, 0], sizes = [8, 16], strides = [1, 1]} : vector<10x16xf32> to vector<8x16xf32>
    %c14 = arith.constant 14 : index
    %107 = memref.load %arg6[%c14] : memref<36xf32, #tpu.memory_space<smem>>
    %108 = vector.broadcast %107 : f32 to vector<8x16xf32>
    %109 = arith.mulf %106, %108 : vector<8x16xf32>
    %110 = arith.addf %105, %109 : vector<8x16xf32>
    %111 = vector.extract_strided_slice %78 {offsets = [2, 0], sizes = [8, 16], strides = [1, 1]} : vector<10x16xf32> to vector<8x16xf32>
    %c15 = arith.constant 15 : index
    %112 = memref.load %arg6[%c15] : memref<36xf32, #tpu.memory_space<smem>>
    %113 = vector.broadcast %112 : f32 to vector<8x16xf32>
    %114 = arith.mulf %111, %113 : vector<8x16xf32>
    %115 = arith.addf %65, %114 : vector<8x16xf32>
    %116 = vector.extract_strided_slice %76 {offsets = [2, 0], sizes = [8, 16], strides = [1, 1]} : vector<10x16xf32> to vector<8x16xf32>
    %c16 = arith.constant 16 : index
    %117 = memref.load %arg6[%c16] : memref<36xf32, #tpu.memory_space<smem>>
    %118 = vector.broadcast %117 : f32 to vector<8x16xf32>
    %119 = arith.mulf %116, %118 : vector<8x16xf32>
    %120 = arith.addf %115, %119 : vector<8x16xf32>
    %121 = vector.extract_strided_slice %80 {offsets = [2, 0], sizes = [8, 16], strides = [1, 1]} : vector<10x16xf32> to vector<8x16xf32>
    %c17 = arith.constant 17 : index
    %122 = memref.load %arg6[%c17] : memref<36xf32, #tpu.memory_space<smem>>
    %123 = vector.broadcast %122 : f32 to vector<8x16xf32>
    %124 = arith.mulf %121, %123 : vector<8x16xf32>
    %125 = arith.addf %120, %124 : vector<8x16xf32>
    %c0_29 = arith.constant 0 : index
    %c2_30 = arith.constant 2 : index
    %c0_31 = arith.constant 0 : index
    %c0_32 = arith.constant 0 : index
    %126 = vector.load %arg2[%c0_29, %c2_30, %c0_31, %c0_32] : memref<1x4x8x16xf32, #tpu.memory_space<vmem>>, vector<1x1x8x16xf32>
    %127 = vector.shape_cast %126 : vector<1x1x8x16xf32> to vector<8x16xf32>
    %c0_33 = arith.constant 0 : index
    %c2_34 = arith.constant 2 : index
    %c7_35 = arith.constant 7 : index
    %c0_36 = arith.constant 0 : index
    %128 = vector.load %arg3[%c0_33, %c2_34, %c7_35, %c0_36] : memref<1x4x8x16xf32, #tpu.memory_space<vmem>>, vector<1x1x1x16xf32>
    %129 = vector.shape_cast %128 : vector<1x1x1x16xf32> to vector<1x16xf32>
    %130 = vector.broadcast %1 : f32 to vector<1x16xf32>
    %131 = arith.mulf %129, %130 : vector<1x16xf32>
    %c0_37 = arith.constant 0 : index
    %c2_38 = arith.constant 2 : index
    %c0_39 = arith.constant 0 : index
    %c0_40 = arith.constant 0 : index
    %132 = vector.load %arg4[%c0_37, %c2_38, %c0_39, %c0_40] : memref<1x4x8x16xf32, #tpu.memory_space<vmem>>, vector<1x1x1x16xf32>
    %133 = vector.shape_cast %132 : vector<1x1x1x16xf32> to vector<1x16xf32>
    %134 = vector.broadcast %3 : f32 to vector<1x16xf32>
    %135 = arith.mulf %133, %134 : vector<1x16xf32>
    %136 = tpu.concatenate %131, %127, %135 in 0 : vector<1x16xf32>, vector<8x16xf32>, vector<1x16xf32> -> vector<10x16xf32>
    %137 = vector.extract_strided_slice %136 {offsets = [0, 0], sizes = [10, 15], strides = [1, 1]} : vector<10x16xf32> to vector<10x15xf32>
    %138 = tpu.concatenate %4, %137 in 1 : vector<10x1xf32>, vector<10x15xf32> -> vector<10x16xf32>
    %139 = vector.extract_strided_slice %136 {offsets = [0, 1], sizes = [10, 15], strides = [1, 1]} : vector<10x16xf32> to vector<10x15xf32>
    %140 = tpu.concatenate %139, %4 in 1 : vector<10x15xf32>, vector<10x1xf32> -> vector<10x16xf32>
    %141 = vector.extract_strided_slice %138 {offsets = [0, 0], sizes = [8, 16], strides = [1, 1]} : vector<10x16xf32> to vector<8x16xf32>
    %c18 = arith.constant 18 : index
    %142 = memref.load %arg6[%c18] : memref<36xf32, #tpu.memory_space<smem>>
    %143 = vector.broadcast %142 : f32 to vector<8x16xf32>
    %144 = arith.mulf %141, %143 : vector<8x16xf32>
    %145 = arith.addf %95, %144 : vector<8x16xf32>
    %146 = vector.extract_strided_slice %136 {offsets = [0, 0], sizes = [8, 16], strides = [1, 1]} : vector<10x16xf32> to vector<8x16xf32>
    %c19 = arith.constant 19 : index
    %147 = memref.load %arg6[%c19] : memref<36xf32, #tpu.memory_space<smem>>
    %148 = vector.broadcast %147 : f32 to vector<8x16xf32>
    %149 = arith.mulf %146, %148 : vector<8x16xf32>
    %150 = arith.addf %145, %149 : vector<8x16xf32>
    %151 = vector.extract_strided_slice %140 {offsets = [0, 0], sizes = [8, 16], strides = [1, 1]} : vector<10x16xf32> to vector<8x16xf32>
    %c20 = arith.constant 20 : index
    %152 = memref.load %arg6[%c20] : memref<36xf32, #tpu.memory_space<smem>>
    %153 = vector.broadcast %152 : f32 to vector<8x16xf32>
    %154 = arith.mulf %151, %153 : vector<8x16xf32>
    %155 = arith.addf %150, %154 : vector<8x16xf32>
    %156 = vector.extract_strided_slice %138 {offsets = [1, 0], sizes = [8, 16], strides = [1, 1]} : vector<10x16xf32> to vector<8x16xf32>
    %c21 = arith.constant 21 : index
    %157 = memref.load %arg6[%c21] : memref<36xf32, #tpu.memory_space<smem>>
    %158 = vector.broadcast %157 : f32 to vector<8x16xf32>
    %159 = arith.mulf %156, %158 : vector<8x16xf32>
    %160 = arith.addf %110, %159 : vector<8x16xf32>
    %161 = vector.extract_strided_slice %136 {offsets = [1, 0], sizes = [8, 16], strides = [1, 1]} : vector<10x16xf32> to vector<8x16xf32>
    %c22 = arith.constant 22 : index
    %162 = memref.load %arg6[%c22] : memref<36xf32, #tpu.memory_space<smem>>
    %163 = vector.broadcast %162 : f32 to vector<8x16xf32>
    %164 = arith.mulf %161, %163 : vector<8x16xf32>
    %165 = arith.addf %160, %164 : vector<8x16xf32>
    %166 = vector.extract_strided_slice %140 {offsets = [1, 0], sizes = [8, 16], strides = [1, 1]} : vector<10x16xf32> to vector<8x16xf32>
    %c23 = arith.constant 23 : index
    %167 = memref.load %arg6[%c23] : memref<36xf32, #tpu.memory_space<smem>>
    %168 = vector.broadcast %167 : f32 to vector<8x16xf32>
    %169 = arith.mulf %166, %168 : vector<8x16xf32>
    %170 = arith.addf %165, %169 : vector<8x16xf32>
    %171 = vector.extract_strided_slice %138 {offsets = [2, 0], sizes = [8, 16], strides = [1, 1]} : vector<10x16xf32> to vector<8x16xf32>
    %c24 = arith.constant 24 : index
    %172 = memref.load %arg6[%c24] : memref<36xf32, #tpu.memory_space<smem>>
    %173 = vector.broadcast %172 : f32 to vector<8x16xf32>
    %174 = arith.mulf %171, %173 : vector<8x16xf32>
    %175 = arith.addf %125, %174 : vector<8x16xf32>
    %176 = vector.extract_strided_slice %136 {offsets = [2, 0], sizes = [8, 16], strides = [1, 1]} : vector<10x16xf32> to vector<8x16xf32>
    %c25 = arith.constant 25 : index
    %177 = memref.load %arg6[%c25] : memref<36xf32, #tpu.memory_space<smem>>
    %178 = vector.broadcast %177 : f32 to vector<8x16xf32>
    %179 = arith.mulf %176, %178 : vector<8x16xf32>
    %180 = arith.addf %175, %179 : vector<8x16xf32>
    %181 = vector.extract_strided_slice %140 {offsets = [2, 0], sizes = [8, 16], strides = [1, 1]} : vector<10x16xf32> to vector<8x16xf32>
    %c26 = arith.constant 26 : index
    %182 = memref.load %arg6[%c26] : memref<36xf32, #tpu.memory_space<smem>>
    %183 = vector.broadcast %182 : f32 to vector<8x16xf32>
    %184 = arith.mulf %181, %183 : vector<8x16xf32>
    %185 = arith.addf %180, %184 : vector<8x16xf32>
    %c0_41 = arith.constant 0 : index
    %c3_42 = arith.constant 3 : index
    %c0_43 = arith.constant 0 : index
    %c0_44 = arith.constant 0 : index
    %186 = vector.load %arg2[%c0_41, %c3_42, %c0_43, %c0_44] : memref<1x4x8x16xf32, #tpu.memory_space<vmem>>, vector<1x1x8x16xf32>
    %187 = vector.shape_cast %186 : vector<1x1x8x16xf32> to vector<8x16xf32>
    %c0_45 = arith.constant 0 : index
    %c3_46 = arith.constant 3 : index
    %c7_47 = arith.constant 7 : index
    %c0_48 = arith.constant 0 : index
    %188 = vector.load %arg3[%c0_45, %c3_46, %c7_47, %c0_48] : memref<1x4x8x16xf32, #tpu.memory_space<vmem>>, vector<1x1x1x16xf32>
    %189 = vector.shape_cast %188 : vector<1x1x1x16xf32> to vector<1x16xf32>
    %190 = vector.broadcast %1 : f32 to vector<1x16xf32>
    %191 = arith.mulf %189, %190 : vector<1x16xf32>
    %c0_49 = arith.constant 0 : index
    %c3_50 = arith.constant 3 : index
    %c0_51 = arith.constant 0 : index
    %c0_52 = arith.constant 0 : index
    %192 = vector.load %arg4[%c0_49, %c3_50, %c0_51, %c0_52] : memref<1x4x8x16xf32, #tpu.memory_space<vmem>>, vector<1x1x1x16xf32>
    %193 = vector.shape_cast %192 : vector<1x1x1x16xf32> to vector<1x16xf32>
    %194 = vector.broadcast %3 : f32 to vector<1x16xf32>
    %195 = arith.mulf %193, %194 : vector<1x16xf32>
    %196 = tpu.concatenate %191, %187, %195 in 0 : vector<1x16xf32>, vector<8x16xf32>, vector<1x16xf32> -> vector<10x16xf32>
    %197 = vector.extract_strided_slice %196 {offsets = [0, 0], sizes = [10, 15], strides = [1, 1]} : vector<10x16xf32> to vector<10x15xf32>
    %198 = tpu.concatenate %4, %197 in 1 : vector<10x1xf32>, vector<10x15xf32> -> vector<10x16xf32>
    %199 = vector.extract_strided_slice %196 {offsets = [0, 1], sizes = [10, 15], strides = [1, 1]} : vector<10x16xf32> to vector<10x15xf32>
    %200 = tpu.concatenate %199, %4 in 1 : vector<10x15xf32>, vector<10x1xf32> -> vector<10x16xf32>
    %201 = vector.extract_strided_slice %198 {offsets = [0, 0], sizes = [8, 16], strides = [1, 1]} : vector<10x16xf32> to vector<8x16xf32>
    %c27 = arith.constant 27 : index
    %202 = memref.load %arg6[%c27] : memref<36xf32, #tpu.memory_space<smem>>
    %203 = vector.broadcast %202 : f32 to vector<8x16xf32>
    %204 = arith.mulf %201, %203 : vector<8x16xf32>
    %205 = arith.addf %155, %204 : vector<8x16xf32>
    %206 = vector.extract_strided_slice %196 {offsets = [0, 0], sizes = [8, 16], strides = [1, 1]} : vector<10x16xf32> to vector<8x16xf32>
    %c28 = arith.constant 28 : index
    %207 = memref.load %arg6[%c28] : memref<36xf32, #tpu.memory_space<smem>>
    %208 = vector.broadcast %207 : f32 to vector<8x16xf32>
    %209 = arith.mulf %206, %208 : vector<8x16xf32>
    %210 = arith.addf %205, %209 : vector<8x16xf32>
    %211 = vector.extract_strided_slice %200 {offsets = [0, 0], sizes = [8, 16], strides = [1, 1]} : vector<10x16xf32> to vector<8x16xf32>
    %c29 = arith.constant 29 : index
    %212 = memref.load %arg6[%c29] : memref<36xf32, #tpu.memory_space<smem>>
    %213 = vector.broadcast %212 : f32 to vector<8x16xf32>
    %214 = arith.mulf %211, %213 : vector<8x16xf32>
    %215 = arith.addf %210, %214 : vector<8x16xf32>
    %216 = vector.extract_strided_slice %198 {offsets = [1, 0], sizes = [8, 16], strides = [1, 1]} : vector<10x16xf32> to vector<8x16xf32>
    %c30 = arith.constant 30 : index
    %217 = memref.load %arg6[%c30] : memref<36xf32, #tpu.memory_space<smem>>
    %218 = vector.broadcast %217 : f32 to vector<8x16xf32>
    %219 = arith.mulf %216, %218 : vector<8x16xf32>
    %220 = arith.addf %170, %219 : vector<8x16xf32>
    %221 = vector.extract_strided_slice %196 {offsets = [1, 0], sizes = [8, 16], strides = [1, 1]} : vector<10x16xf32> to vector<8x16xf32>
    %c31 = arith.constant 31 : index
    %222 = memref.load %arg6[%c31] : memref<36xf32, #tpu.memory_space<smem>>
    %223 = vector.broadcast %222 : f32 to vector<8x16xf32>
    %224 = arith.mulf %221, %223 : vector<8x16xf32>
    %225 = arith.addf %220, %224 : vector<8x16xf32>
    %226 = vector.extract_strided_slice %200 {offsets = [1, 0], sizes = [8, 16], strides = [1, 1]} : vector<10x16xf32> to vector<8x16xf32>
    %c32 = arith.constant 32 : index
    %227 = memref.load %arg6[%c32] : memref<36xf32, #tpu.memory_space<smem>>
    %228 = vector.broadcast %227 : f32 to vector<8x16xf32>
    %229 = arith.mulf %226, %228 : vector<8x16xf32>
    %230 = arith.addf %225, %229 : vector<8x16xf32>
    %231 = vector.extract_strided_slice %198 {offsets = [2, 0], sizes = [8, 16], strides = [1, 1]} : vector<10x16xf32> to vector<8x16xf32>
    %c33 = arith.constant 33 : index
    %232 = memref.load %arg6[%c33] : memref<36xf32, #tpu.memory_space<smem>>
    %233 = vector.broadcast %232 : f32 to vector<8x16xf32>
    %234 = arith.mulf %231, %233 : vector<8x16xf32>
    %235 = arith.addf %185, %234 : vector<8x16xf32>
    %236 = vector.extract_strided_slice %196 {offsets = [2, 0], sizes = [8, 16], strides = [1, 1]} : vector<10x16xf32> to vector<8x16xf32>
    %c34 = arith.constant 34 : index
    %237 = memref.load %arg6[%c34] : memref<36xf32, #tpu.memory_space<smem>>
    %238 = vector.broadcast %237 : f32 to vector<8x16xf32>
    %239 = arith.mulf %236, %238 : vector<8x16xf32>
    %240 = arith.addf %235, %239 : vector<8x16xf32>
    %241 = vector.extract_strided_slice %200 {offsets = [2, 0], sizes = [8, 16], strides = [1, 1]} : vector<10x16xf32> to vector<8x16xf32>
    %c35 = arith.constant 35 : index
    %242 = memref.load %arg6[%c35] : memref<36xf32, #tpu.memory_space<smem>>
    %243 = vector.broadcast %242 : f32 to vector<8x16xf32>
    %244 = arith.mulf %241, %243 : vector<8x16xf32>
    %245 = arith.addf %240, %244 : vector<8x16xf32>
    %246 = arith.addf %215, %230 : vector<8x16xf32>
    %247 = arith.addf %246, %245 : vector<8x16xf32>
    %c0_53 = arith.constant 0 : index
    %c0_54 = arith.constant 0 : index
    %c0_55 = arith.constant 0 : index
    %248 = vector.load %arg5[%c0_53, %c0_54, %c0_55] : memref<1x8x16xf32, #tpu.memory_space<vmem>>, vector<1x8x16xf32>
    %249 = vector.shape_cast %248 : vector<1x8x16xf32> to vector<8x16xf32>
    %250 = arith.addf %247, %249 : vector<8x16xf32>
    %251 = tpu.iota {dimensions = array<i32: 1>} : vector<8x16xi32>
    %cst_56 = arith.constant dense<0xFF800000> : vector<8xf32>
    %252 = vector.multi_reduction <maximumf>, %250, %cst_56 [1] : vector<8x16xf32> to vector<8xf32>
    %253 = vector.shape_cast %252 : vector<8xf32> to vector<8x1xf32>
    %254 = vector.broadcast %253 : vector<8x1xf32> to vector<8x16xf32>
    %255 = arith.cmpf oeq, %250, %254 : vector<8x16xf32>
    %c16_i32 = arith.constant 16 : i32
    %256 = vector.broadcast %c16_i32 : i32 to vector<8x16xi32>
    %257 = arith.select %255, %251, %256 : vector<8x16xi1>, vector<8x16xi32>
    %cst_57 = arith.constant dense<2147483647> : vector<8xi32>
    %258 = vector.multi_reduction <minsi>, %257, %cst_57 [1] : vector<8x16xi32> to vector<8xi32>
    %259 = vector.shape_cast %258 : vector<8xi32> to vector<8x1xi32>
    %260 = vector.broadcast %259 : vector<8x1xi32> to vector<8x16xi32>
    %261 = arith.cmpi eq, %251, %260 : vector<8x16xi32>
    %262 = arith.extui %261 : vector<8x16xi1> to vector<8x16xi32>
    %263 = arith.sitofp %262 : vector<8x16xi32> to vector<8x16xf32>
    %c0_58 = arith.constant 0 : index
    %c0_59 = arith.constant 0 : index
    %c0_60 = arith.constant 0 : index
    %264 = vector.load %arg7[%c0_58, %c0_59, %c0_60] : memref<1x8x16xf32, #tpu.memory_space<vmem>>, vector<1x8x16xf32>
    %265 = vector.shape_cast %264 : vector<1x8x16xf32> to vector<8x16xf32>
    %266 = vector.shape_cast %263 : vector<8x16xf32> to vector<1x8x16xf32>
    tpu.vector_store %arg7[%c0_58, %c0_59, %c0_60], %266 {strides = array<i32>} : memref<1x8x16xf32, #tpu.memory_space<vmem>>, vector<1x8x16xf32>,
    return
  }
  func.func @transform_0(%arg0: i32, %arg1: i32) -> (i32, i32, i32, i32) {
    %c0_i32 = arith.constant 0 : i32
    %c0_i32_0 = arith.constant 0 : i32
    %c0_i32_1 = arith.constant 0 : i32
    return %arg0, %c0_i32, %arg1, %c0_i32_0 : i32, i32, i32, i32
  }
  func.func @transform_1(%arg0: i32, %arg1: i32) -> (i32, i32, i32, i32) {
    %c1_i32 = arith.constant 1 : i32
    %0 = arith.muli %arg1, %c1_i32 : i32
    %c1_i32_0 = arith.constant 1 : i32
    %1 = arith.subi %0, %c1_i32_0 : i32
    %c0_i32 = arith.constant 0 : i32
    %2 = arith.maxsi %1, %c0_i32 : i32
    %c0_i32_1 = arith.constant 0 : i32
    %c0_i32_2 = arith.constant 0 : i32
    %c0_i32_3 = arith.constant 0 : i32
    return %arg0, %c0_i32_1, %2, %c0_i32_2 : i32, i32, i32, i32
  }
  func.func @transform_2(%arg0: i32, %arg1: i32) -> (i32, i32, i32, i32) {
    %c1_i32 = arith.constant 1 : i32
    %0 = arith.muli %arg1, %c1_i32 : i32
    %c1_i32_0 = arith.constant 1 : i32
    %1 = arith.addi %0, %c1_i32_0 : i32
    %c1_i32_1 = arith.constant 1 : i32
    %2 = arith.minsi %1, %c1_i32_1 : i32
    %c0_i32 = arith.constant 0 : i32
    %c0_i32_2 = arith.constant 0 : i32
    %c0_i32_3 = arith.constant 0 : i32
    return %arg0, %c0_i32, %2, %c0_i32_2 : i32, i32, i32, i32
  }
  func.func @transform_3(%arg0: i32, %arg1: i32) -> (i32, i32, i32) {
    %c0_i32 = arith.constant 0 : i32
    %c0_i32_0 = arith.constant 0 : i32
    return %arg0, %arg1, %c0_i32 : i32, i32, i32
  }
  func.func @transform_4(%arg0: i32, %arg1: i32) -> i32 {
    %c0_i32 = arith.constant 0 : i32
    %c0_i32_0 = arith.constant 0 : i32
    return %c0_i32 : i32
  }
  func.func @transform_5(%arg0: i32, %arg1: i32) -> (i32, i32, i32) {
    %c0_i32 = arith.constant 0 : i32
    %c0_i32_0 = arith.constant 0 : i32
    return %arg0, %arg1, %c0_i32 : i32, i32, i32
  }
}

</mosaic_0001>

<bundles_post_ra>
// kernel: tpu_custom_call.1
= control target key start
LH: loop header
LB: loop body
LE: loop exit
PB: predicated region body
PF: predicated region fallthrough
CT: control target
= control target key end

     0   :  { %s2313_s0 = inlined_call_operand.hbm [shape: f32[2,4,16,16], index: 0, kind: input, shape index: {}]   ;;  %s2314_s1 = inlined_call_operand.hbm [shape: f32[2,4,16,16], index: 1, kind: input, shape index: {}]   ;;  %s2315_s2 = inlined_call_operand.hbm [shape: f32[2,4,16,16], index: 2, kind: input, shape index: {}]   ;;  %s2316_s3 = inlined_call_operand.hbm [shape: f32[2,16,16], index: 3, kind: input, shape index: {}]   ;;  %s2317_s4 = inlined_call_operand.vmem [shape: f32[36], index: 4, kind: input, shape index: {}]   ;;  %s2318_s5 = inlined_call_operand.hbm [shape: f32[2,16,16], index: 5, kind: output, shape index: {}]  }
   0x1   :  { %2352 = sst [smem:[#allocation36_spill]] %s2313_s0 }
   0x2   :  { %2353 = sst [smem:[#allocation37_spill]] %s2314_s1 }
   0x3   :  { %2354 = sst [smem:[#allocation38_spill]] %s2315_s2 }
   0x4   :  { %2355 = sst [smem:[#allocation39_spill]] %s2316_s3 }
   0x5   :  { %2356 = sst [smem:[#allocation40_spill]] %s2317_s4 }
   0x6   :  { %2357 = sst [smem:[#allocation41_spill]] %s2318_s5 }
   0x7   :  { %10 = vsyncpa [#allocation3], 0 }
   0x8   :  { %12 = vsyncpa [#allocation3 + $0x1], 0 }
   0x9   :  { %13 = vsyncpa [#allocation7], 0 }
   0xa   :  { %15 = vsyncpa [#allocation7 + $0x1], 0 }
   0xb   :  { %16 = vsyncpa [#allocation10], 0 }
   0xc   :  { %18 = vsyncpa [#allocation10 + $0x1], 0 }
   0xd   :  { %19 = vsyncpa [#allocation5], 0 }
   0xe   :  { %20 = vsyncpa [#allocation4], 0 }
   0xf   :  { %22 = vsyncpa [#allocation4 + $0x1], 0  ;;  %s1556_s18 = smov 0   ;;  %s1558_s19 = smov 0  }
  0x10   :  { %s1560_s20 = smov 0   ;;  %s1562_s21 = smov 0  }
  0x11   :  { %s1564_s22 = smov 0   ;;  %s1566_s23 = smov 0  }
  0x12   :  { %s1568_s24 = smov 0   ;;  %s1570_s25 = smov 0  }
  0x13   :  { %s1572_s26 = smov 0   ;;  %s1574_s27 = smov 0  }
  0x14   :  { %s1576_s28 = smov 0   ;;  %s1578_s29 = smov 0  }
  0x15   :  { %s1580_s30 = smov 0   ;;  %s1582_s6 = smov 0  }
  0x16 LB: > { %2358 = sst [smem:[#allocation19_spill]] %s1476_s22  ;;  %s37_s7 = sadd.s32 1, %s1504_s29  ;;  %s1512_s6 = sphi %s1582_s6, %s28_s6   ;;  %s1508_s30 = sphi %s1580_s30, %s2431_s30   ;;  %s1504_s29 = sphi %s1578_s29, %s2430_s29   ;;  %s1500_s28 = sphi %s1576_s28, %s2429_s28   ;;  %s1496_s27 = sphi %s1574_s27, %s2428_s27   ;;  %s1492_s26 = sphi %s1572_s26, %s2427_s26   ;;  %s1488_s25 = sphi %s1570_s25, %s2436_s25   ;;  %s1484_s24 = sphi %s1568_s24, %s2435_s24   ;;  %s1480_s23 = sphi %s1566_s23, %s2425_s23   ;;  %s1476_s22 = sphi %s1564_s22, %s2424_s22   ;;  %s1472_s21 = sphi %s1562_s21, %s2423_s21   ;;  %s1468_s20 = sphi %s1560_s20, %s2434_s20   ;;  %s1464_s19 = sphi %s1558_s19, %s2433_s19   ;;  %s1460_s18 = sphi %s1556_s18, %s2432_s18  }
  0x17   : > { %2359 = sst [smem:[#allocation20_spill]] %s1480_s23  ;;  %s40_s8 = sadd.s32 1, %s1508_s30 }
  0x18   : > { %2360 = sst [smem:[#allocation21_spill]] %s1484_s24  ;;  %p38_p0 = scmp.ge.s32.totalorder %s37_s7, 2 }
  0x19   : > { %2361 = sst [smem:[#allocation22_spill]] %s1492_s26  ;;  %p2326_p1 = scmp.eq.s32.totalorder %s1512_s6, 0 }
  0x1a   : > { %2362 = sst [smem:[#allocation23_spill]] %s1496_s27  ;;  %s83_s9 = sadd.s32 1, %s1480_s23 }
  0x1b   : > { %2363 = sst [smem:[#allocation24_spill]] %s1500_s28  ;;  %s2438_s7 = smov (%p38_p0, %s37_s7), 0 }
  0x1c   : > { %2364 = sst [smem:[#allocation25_spill]] %s1504_s29  ;;  %s2440_s8 = smov (!%p38_p0, %s40_s8), %s1508_s30 }
  0x1d   : > { %2365 = sst [smem:[#allocation26_spill]] %s1508_s30  ;;  %s45_s10 = ssub.s32 %s1504_s29, %s2438_s7 }
  0x1e   : > { %2366 = sst [smem:[#allocation27_spill]] %s2438_s7  ;;  %p42_p2 = scmp.ge.s32.totalorder %s2440_s8, 2 }
  0x1f   : > { %p90_p3 = scmp.ne.s32.totalorder %s1480_s23, %s1476_s22  ;;  %p2325_p6 = scmp.lt.s32.totalorder %s1512_s6, 4 }
  0x20   : > { %s2442_s8 = smov (%p42_p2, %s2440_s8), 0  ;;  %s264_s15 = sand.u32 1, %s1512_s6  }
  0x21   : > { %2367 = sst [smem:[#allocation28_spill]] %s2442_s8  ;;  %s1641_s11 = ssub.s32 %s1508_s30, %s2442_s8 }
  0x22   : > { %s1644_s12 = sor.u32 %s45_s10, %s1641_s11  ;;  %p1648_p4 = por %p90_p3, %p2326_p1 }
  0x23   : > { %p2323_p7 = scmp.eq.s32.totalorder %s1641_s11, 0  ;;  %s266_s16 = sand.u32 1, %s1480_s23  }
  0x24   : > { %s996_s8 = sshll.u32 %s266_s16, 5  ;;  %s2324_s7 = sshll.u32 %s1508_s30, 10 }
  0x25   : > { %s1661_s17 = scalar_select %p2323_p7, %s1480_s23, %s83_s9  }
  0x26   : > { %s2370_s1 = sld [smem:[#allocation37_spill]]  ;;  %s268_s27 = scalar_lea.vmem [#allocation6], %s996_s8 }
  0x27   : > { %2369 = sst [smem:[#allocation29_spill]] %s1661_s17  ;;  %s279_s3 = sshll.u32 %s268_s27, 4  ;;  %s1671_s3 = int_to_ptr.vmem [resolvable:$true] %s279_s3 }
  0x28   : > { %p1677_p8 = pnand %p2325_p6, %p1648_p4  ;;  %s1681_s16 = scalar_lea.sflag [#allocation7], %s264_s15 }
  0x2a   : > { %p1223_p10 = pneg %p1677_p8 }
  0x2c   : > { %s1669_s28 = scalar_lea.hbm %s2370_s1, %s2324_s7  ;;  %s1226_s27 = scalar_lea.hbm %s2370_s1, 2048 }
  0x2d   : > { %s1221_s14 = scalar_lea.hbm %s1669_s28, 512  ;;  %p1227_p13 = scmp.lt.s32.totalorder %s1669_s28, %s2370_s1 }
  0x2e   : > { %p1222_p9 = scmp.ne.s32.totalorder %s1669_s28, %s1221_s14  ;;  %p1228_p0 = scmp.lt.s32.totalorder %s1226_s27, %s1221_s14 }
  0x30   : > { %p1224_p11 = pnand %p1223_p10, %p1222_p9  ;;  %p1229_p2 = por %p1228_p0, %p1227_p13 }
  0x32   : > { %p1225_p12 = pneg %p1224_p11 }
  0x34   : > { %p1230_p3 = pnand %p1229_p2, %p1225_p12 }
  0x36   : > { %1233 = shalt.err (!%p1230_p3)
}
  0x37   : > { %s1234_s15 = scalar_lea.vmem %s1671_s3, 512  ;;  %s1514_s7 = smov [#allocation6]  }
  0x38   : > { %p1235_p4 = scmp.ne.s32.totalorder %s1671_s3, %s1234_s15  ;;  %s1239_s17 = sshll.u32 %s1514_s7, 4  ;;  %s1240_s17 = int_to_ptr.vmem [resolvable:$false] %s1239_s17 }
  0x39   : > { %s1241_s5 = scalar_lea.vmem %s1240_s17, 1024  ;;  %p1242_p11 = scmp.lt.s32.totalorder %s1671_s3, %s1240_s17 }
  0x3a   : > { %p1237_p7 = pnand %p1235_p4, %p1223_p10  ;;  %p1243_p6 = scmp.lt.s32.totalorder %s1241_s5, %s1234_s15 }
  0x3c   : > { %p1238_p9 = pneg %p1237_p7  ;;  %p1244_p1 = por %p1243_p6, %p1242_p11 }
  0x3e   : > { %p1245_p5 = pnand %p1244_p1, %p1238_p9 }
  0x40   : > { %1248 = shalt.err (!%p1245_p5)
}
  0x41   : > { %s2328_s14 = smov 256   ;;  %s2330_s7 = smov 128  }
  0x42   : > { %s2332_s17 = smov 8   ;;  %s1706_s8 = sadd.s32 4294967295, %s1512_s6  }
  0x43   : > { %1087 = dma.hbm_to_vmem [thread:$0]  (!%p1677_p8), %s1669_s28, 512, %s1671_s3, %s1681_s16, %s2328_s14, %s2330_s7, %s2332_s17  }
  0x44   : > { %s987_s27 = sadd.s32 4294967294, %s1512_s6   ;;  %s49_s10 = sadd.s32 1, %s1492_s26 }
  0x45   : > { %p2372_p1 = scmp.eq.s32.totalorder %s1644_s12, 0  ;;  %p56_p5 = scmp.ne.s32.totalorder %s1492_s26, %s1488_s25 }
  0x46   : > { %p62_p6 = scmp.ne.s32.totalorder %s1488_s25, %s1484_s24  ;;  %p2347_p7 = scmp.eq.s32.totalorder %s1706_s8, 0 }
  0x47   : > { %s1713_s13 = scalar_select %p2372_p1, %s1492_s26, %s49_s10  }
  0x48   : > { %p96_p8 = scmp.ne.s32.totalorder %s1476_s22, %s1472_s21  ;;  %p2374_p10 = scmp.eq.s32.totalorder %s1512_s6, 0 }
  0x49   : > { %2373 = sst [smem:[#allocation30_spill]] %s1713_s13  ;;  %p130_p13 = scmp.ne.s32.totalorder %s1464_s19, %s1460_s18 }
  0x4a   : > { %p1724_p12 = por %p2374_p10, %p56_p5  ;;  %p1735_p0 = por %p2347_p7, %p62_p6 }
  0x4b   : > { %p1741_p2 = por %p96_p8, %p2347_p7  ;;  %p1747_p3 = por %p130_p13, %p2347_p7 }
  0x4c   : > { %s2376_s28 = scalar_select %p1735_p0, 1, 0 }
  0x4d   : > { %s2377_s12 = scalar_select %p1741_p2, 1, 0 }
  0x4e   : > { %s2379_s21 = scalar_select %p1747_p3, 1, 0 }
  0x4f   : > { %2378 = sst [smem:[#allocation31_spill]] %s2377_s12  ;;  %p205_p4 = scmp.eq.s32.totalorder %s1706_s8, 3 }
  0x50   : > { %2380 = sst [smem:[#allocation32_spill]] %s2379_s21  ;;  %p211_p9 = scmp.eq.s32.totalorder %s987_s27, 3 }
  0x51   : > { %p990_p11 = scmp.ge.s32.totalorder %s1512_s6, 1  ;;  %p1753_p1 = por %p205_p4, %p56_p5 }
  0x52   : > { %p218_p10 = scmp.lt.s32.totalorder %s1512_s6, 5  ;;  %p1761_p0 = por %p211_p9, %p62_p6 }
  0x53   : > { %s2381_s18 = scalar_select %p1753_p1, 1, 0 }
  0x54   : > { %s2383_s9 = scalar_select %p1761_p0, 1, 0 }
  0x55   : > { %2382 = sst [smem:[#allocation33_spill]] %s2381_s18  ;;  %p1765_p8 = pnand %p990_p11, %p218_p10 }
  0x56   : > { %2384 = sst [smem:[#allocation34_spill]] %s2383_s9  ;;  %s1775_s14 = sand.u32 1, %s1492_s26  }
  0x57   : > { %s2386_s4 = sld [smem:[#allocation40_spill]]  ;;  %p1077_p5 = pneg %p1765_p8 }
  0x58   : > { %s993_s7 = sshll.u32 %s1775_s14, 5  ;;  %s2388_s1 = sshll.u32 %s1508_s30, 3 }
  0x59   : > { %p1780_p6 = pnand %p1077_p5, %p2347_p7  ;;  %s251_s13 = sadd.s32 %s1504_s29, %s2388_s1 }
  0x5a   : > { %s246_s23 = scalar_lea.vmem [#allocation2], %s993_s7  ;;  %s995_s5 = sshll.u32 %s251_s13, 7 }
  0x5b   : > { %s254_s9 = sshll.u32 %s246_s23, 4  ;;  %p1251_p4 = pneg %p1780_p6  ;;  %s255_s9 = int_to_ptr.vmem [resolvable:$true] %s254_s9 }
  0x5d   : > { %s231_s27 = sshll.u32 %s2386_s4, 4  ;;  %s232_s27 = int_to_ptr.vmem [resolvable:$true] %s231_s27 }
  0x5e   : > { %s1249_s10 = scalar_lea.vmem %s232_s27, 16  ;;  %p1257_p10 = scmp.lt.s32.totalorder %s232_s27, %s232_s27 }
  0x5f   : > { %p1250_p13 = scmp.ne.s32.totalorder %s232_s27, %s1249_s10  ;;  %p1258_p0 = scmp.lt.s32.totalorder %s1249_s10, %s1249_s10 }
  0x61   : > { %p1252_p9 = pnand %p1251_p4, %p1250_p13  ;;  %p1259_p1 = por %p1258_p0, %p1257_p10 }
  0x63   : > { %p1253_p11 = pneg %p1252_p9 }
  0x65   : > { %p1260_p3 = pnand %p1259_p1, %p1253_p11 }
  0x67   : > { %1263 = shalt.err (!%p1260_p3)
}
  0x68   : > { %s1518_s4 = smov [#allocation11]   ;;  %s2389_s0 = sld [smem:[#allocation36_spill]] }
  0x69   : > { %1080 = dma.vmem_to_smem (!%p1780_p6), %s232_s27, 16, %s1518_s4, [#allocation5]  }
  0x6a   : > { %p2390_p5 = scmp.lt.s32.totalorder %s1512_s6, 4  ;;  %s243_s10 = scalar_lea.sflag [#allocation3], %s1775_s14 }
  0x6b   : > { %s1277_s17 = scalar_lea.vmem %s255_s9, 512  ;;  %s1519_s4 = smov [#allocation2]  }
  0x6c   : > { %p1798_p13 = pnand %p2390_p5, %p1724_p12  ;;  %p1278_p3 = scmp.ne.s32.totalorder %s255_s9, %s1277_s17 }
  0x6d   : > { %s1282_s27 = sshll.u32 %s1519_s4, 4  ;;  %s1283_s27 = int_to_ptr.vmem [resolvable:$false] %s1282_s27 }
  0x6e   : > { %s253_s7 = scalar_lea.hbm %s2389_s0, %s995_s5  ;;  %p2348_p0 = pneg %p1798_p13 }
  0x6f   : > { %s1284_s3 = scalar_lea.vmem %s1283_s27, 1024  ;;  %p1285_p4 = scmp.lt.s32.totalorder %s255_s9, %s1283_s27 }
  0x70   : > { %p1280_p1 = pnand %p1278_p3, %p2348_p0  ;;  %p1286_p12 = scmp.lt.s32.totalorder %s1284_s3, %s1277_s17 }
  0x72   : > { %p1281_p6 = pneg %p1280_p1  ;;  %p1287_p9 = por %p1286_p12, %p1285_p4 }
  0x74   : > { %p1288_p11 = pnand %p1287_p9, %p1281_p6 }
  0x76   : > { %1291 = shalt.err (!%p1288_p11)
}
  0x77   : > { %s2392_s5 = smov 8   ;;  %s2393_s1 = smov 128  }
  0x78   : > { %s2394_s23 = smov 256   ;;  %s117_s17 = sadd.s32 1, %s1468_s20 }
  0x79   : > { %1084 = dma.hbm_to_vmem [thread:$0]  (!%p1798_p13), %s253_s7, 512, %s255_s9, %s243_s10, %s2394_s23, %s2393_s1, %s2392_s5  }
  0x7a   : > { %p124_p10 = scmp.ne.s32.totalorder %s1468_s20, %s1464_s19  ;;  %s291_s4 = sand.u32 1, %s1468_s20  }
  0x7b   : > { %p2395_p5 = scmp.eq.s32.totalorder %s1512_s6, 0  ;;  %s1000_s27 = sshll.u32 %s291_s4, 5 }
  0x7c   : > { %s2396_s3 = sshll.u32 %s1508_s30, 10  ;;  %s2397_s2 = sld [smem:[#allocation38_spill]] }
  0x7d   : > { %p126_p3 = por %p124_p10, %p2395_p5  ;;  %s1456_s0 = sadd.s32 128, %s2396_s3 }
  0x7e   : > { %s293_s21 = scalar_lea.vmem [#allocation8], %s1000_s27  ;;  %p2398_p1 = scmp.eq.s32.totalorder %s1641_s11, 0 }
  0x7f   : > { %s304_s12 = sshll.u32 %s293_s21, 4  ;;  %p2400_p6 = scmp.lt.s32.totalorder %s1512_s6, 4  ;;  %s305_s12 = int_to_ptr.vmem [resolvable:$true] %s304_s12 }
  0x80   : > { %s1827_s22 = scalar_select %p2398_p1, %s1468_s20, %s117_s17  }
  0x81   : > { %p1831_p4 = pnand %p2400_p6, %p126_p3  ;;  %s1003_s7 = sshll.u32 %s1775_s14, 3 }
  0x82   : > { %s303_s18 = scalar_lea.hbm %s2397_s2, %s1456_s0  ;;  %2399 = sst [smem:[#allocation35_spill]] %s1827_s22 }
  0x83   : > { %p1294_p12 = pneg %p1831_p4  ;;  %s1305_s10 = scalar_lea.vmem %s305_s12, 512 }
  0x84   : > { %p1306_p9 = scmp.ne.s32.totalorder %s305_s12, %s1305_s10  ;;  %s1520_s0 = smov [#allocation8]  }
  0x85   : > { %s1310_s24 = sshll.u32 %s1520_s0, 4  ;;  %s1311_s24 = int_to_ptr.vmem [resolvable:$false] %s1310_s24 }
  0x86   : > { %p1308_p11 = pnand %p1306_p9, %p1294_p12  ;;  %s1312_s26 = scalar_lea.vmem %s1311_s24, 1024 }
  0x87   : > { %p1313_p5 = scmp.lt.s32.totalorder %s305_s12, %s1311_s24  ;;  %p1314_p1 = scmp.lt.s32.totalorder %s1312_s26, %s1305_s10 }
  0x88   : > { %p1309_p10 = pneg %p1308_p11 }
  0x89   : > { %p1315_p7 = por %p1314_p1, %p1313_p5 }
  0x8b   : > { %p1316_p0 = pnand %p1315_p7, %p1309_p10 }
  0x8d   : > { %1319 = shalt.err (!%p1316_p0)
}
  0x8e   : > { %1090 = dma.hbm_to_vmem [thread:$0]  (!%p1831_p4), %s303_s18, 512, %s305_s12, %s1681_s16, %s2394_s23, %s2393_s1, %s2392_s5  }
  0x8f   : > { %s1004_s11 = sshll.u32 %s1508_s30, 1  ;;  %s318_s21 = scalar_lea.vmem [#allocation9], %s1003_s7 }
  0x90   : > { %s327_s17 = sshll.u32 %s318_s21, 4  ;;  %s323_s4 = sadd.s32 %s1504_s29, %s1004_s11  ;;  %s328_s17 = int_to_ptr.vmem [resolvable:$true] %s327_s17 }
  0x91   : > { %s1005_s27 = sshll.u32 %s323_s4, 7  ;;  %s2402_s0 = sld [smem:[#allocation39_spill]] }
  0x92   : > { %s315_s9 = scalar_lea.sflag [#allocation10], %s1775_s14  ;;  %s1333_s26 = scalar_lea.vmem %s328_s17, 128 }
  0x93   : > { %p1334_p7 = scmp.ne.s32.totalorder %s328_s17, %s1333_s26  ;;  %p2403_p0 = pneg %p1798_p13 }
  0x94   : > { %s1521_s2 = smov [#allocation9]  }
  0x95   : > { %p1336_p3 = pnand %p1334_p7, %p2403_p0  ;;  %s1338_s22 = sshll.u32 %s1521_s2, 4  ;;  %s1339_s22 = int_to_ptr.vmem [resolvable:$false] %s1338_s22 }
  0x96   : > { %s1340_s16 = scalar_lea.vmem %s1339_s22, 256  ;;  %p1341_p4 = scmp.lt.s32.totalorder %s328_s17, %s1339_s22 }
  0x97   : > { %s325_s24 = scalar_lea.hbm %s2402_s0, %s1005_s27  ;;  %p1337_p6 = pneg %p1336_p3 }
  0x98   : > { %p1342_p12 = scmp.lt.s32.totalorder %s1340_s16, %s1333_s26 }
  0x9a   : > { %p1343_p9 = por %p1342_p12, %p1341_p4 }
  0x9c   : > { %p1344_p11 = pnand %p1343_p9, %p1337_p6 }
  0x9e   : > { %1347 = shalt.err (!%p1344_p11)
}
  0x9f   : > { %1093 = dma.hbm_to_vmem [thread:$0]  (!%p1798_p13), %s325_s24, 128, %s328_s17, %s315_s9  }
  0xa0   : > { %336 = sbr.rel (%p1765_p8) target bundleno = 810 (0x32a), region = 40  ;;  %s1858_s14 = sand.u32 (!%p1765_p8), 1, %s1488_s25  }
  0xa1   : > { %s1007_s2 = sshll.u32 (!%p1765_p8), %s1858_s14, 5  ;;  %s339_s12 = scalar_lea.sflag (!%p1765_p8), [#allocation3], %s1858_s14 }
  0xa2   : > { %s1862_s18 = scalar_lea.vmem (!%p1765_p8), [#allocation2], %s1007_s2  ;;  %p2404_p10 = scmp.ne.s32.totalorder (!%p1765_p8), %s2376_s28, 0 }
  0xa5   : > { %1431 = dma.done.wait (%p2404_p10), %s339_s12, 512  }
  0xa6   : > { %1433 = vsyncadd (%p2404_p10), %s339_s12, 4294966784  ;;  %s2405_s22 = sld [smem:[#allocation19_spill]]  ;;  %s347_s15 = sand.u32 1, %s1706_s8  }
  0xa7   : > { %s348_s23 = scalar_lea.sflag [#allocation7], %s347_s15 }
  0xac   : > { %s349_s5 = sand.u32 1, %s2405_s22  }
  0xad   : > { %s1008_s1 = sshll.u32 %s349_s5, 5 }
  0xae   : > { %s1870_s7 = scalar_lea.vmem [#allocation6], %s1008_s1 }
  0xaf   : > { %1435 = dma.done.wait (%p1741_p2), %s348_s23, 512  }
  0xb0   : > { %1437 = vsyncadd (%p1741_p2), %s348_s23, 4294966784  ;;  %s2407_s11 = sld [smem:[#allocation32_spill]]  ;;  %s358_s21 = sand.u32 1, %s1464_s19  }
  0xb1   : > { %s1009_s17 = sshll.u32 %s358_s21, 5 }
  0xb2   : > { %s1877_s4 = scalar_lea.vmem [#allocation8], %s1009_s17 }
  0xb6   : > { %p2408_p8 = scmp.ne.s32.totalorder %s2407_s11, 0 }
  0xb8   : > { %1439 = dma.done.wait (%p2408_p8), %s348_s23, 512  }
  0xb9   : > { %1441 = vsyncadd (%p2408_p8), %s348_s23, 4294966784  ;;  %s2349_s27 = sshll.u32 %s1858_s14, 3  ;;  %s366_s3 = scalar_lea.sflag [#allocation10], %s1858_s14 }
  0xba   : > { %s1887_s10 = scalar_lea.vmem [#allocation9], %s2349_s27 }
  0xbb   : > { %1443 = dma.done.wait (%p2404_p10), %s366_s3, 128  }
  0xbc   : > { %1445 = vsyncadd (%p2404_p10), %s366_s3, 4294967168  ;;  %p2409_p2 = scmp.eq.s32.totalorder %s1706_s8, 0 }
  0xbe   : > { %1447 = dma.done.wait (%p2409_p2), [#allocation5], 16   ;;  %p2410_p13 = pmov %p2409_p2 }
  0xc0   : > { %1449 = vsyncadd (%p2410_p13), [#allocation5], 4294967280 }
  0xc1   : > { %378 = sfence }
  0xc2   : > { %s2411_s0 = sld [smem:[#allocation23_spill]]  ;;  %v426_v0 = vld [vmem:[%s1862_s18] sm:$0xff]  ;;  %v1021_v3 = vld [vmem:[%s1862_s18 + $0x8] sm:$0xff]  ;;  %vm439_vm0 = vcmask 1040384   ;;  %s1522_s8 = smov 127   ;;  %v1033_v22 = vld [vmem:[%s1862_s18 + $0x10] sm:$0xff] }
  0xc3   : > { %v427_v1 = vld [vmem:[%s1870_s7 + $0x7] sm:$0x1]  ;;  %v434_v2 = vrot.slane %v426_v0, 7  ;;  %v1022_v4 = vld [vmem:[%s1870_s7 + $0xf] sm:$0x1]  ;;  %v519_v11 = vrot.slane %v1021_v3, 7 }
  0xc4   : > { %v430_v5 = vld [vmem:[%s1877_s4] sm:$0x1]  ;;  %v1023_v6 = vld [vmem:[%s1877_s4 + $0x8] sm:$0x1]  ;;  %s1523_s9 = smov 1   ;;  %v601_v24 = vrot.slane %v1033_v22, 7 }
  0xc5   : > { %v1035_v19 = vld [vmem:[%s1877_s4 + $0x10] sm:$0x1]  ;;  %v1034_v23 = vld [vmem:[%s1870_s7 + $0x17] sm:$0x1]  ;;  %v1047_v27 = vld [vmem:[%s1877_s4 + $0x18] sm:$0x1] }
  0xc6   : > { %v1045_v31 = vld [vmem:[%s1862_s18 + $0x18] sm:$0xff]  ;;  %s1967_s26 = sld [smem:[#allocation11 + $0x2]]  ;;  %vm459_vm1 = vcmask 121856   ;;  %vm450_vm2 = vcmask 7168   ;;  %vm758_vm3 = vcmask 1046528   ;;  %vm766_vm4 = vcmask 1045504  }
  0xc7   : > { %v1046_v32 = vld [vmem:[%s1870_s7 + $0x1f] sm:$0x1]  ;;  %v683_v33 = vrot.slane %v1045_v31, 7  ;;  %s1969_s16 = sld [smem:[#allocation11]]  ;;  %vm776_vm5 = vcmask 130048  }
  0xc8   : > { %p422_p5 = scmp.eq.s32.totalorder %s2411_s0, 0  ;;  %p424_p1 = scmp.eq.s32.totalorder %s2411_s0, 1 }
  0xc9   : > { %s1013_s2 = sld [smem:[#allocation11 + $0x1]] }
  0xca   : > { %s423_s28 = scalar_select %p422_p5, 0.0, 1.0 }
  0xcb   : > { %s425_s24 = scalar_select %p424_p1, 0.0, 1.0 }
  0xcc   : > { %v428_v7 = vstv %s423_s28  ;;  %s1971_s12 = sld [smem:[#allocation11 + $0x5]]  ;;  %v471_v39 = vstv %s1967_s26 }
  0xcd   : > { %v429_v8 = vmul.f32 %v428_v7, %v427_v1  ;;  %v431_v9 = vstv %s425_s24  ;;  %v514_v10 = vmul.f32 %v1022_v4, %v428_v7  ;;  %v596_v26 = vmul.f32 %v1034_v23, %v428_v7  ;;  %s1973_s18 = sld [smem:[#allocation11 + $0x8]] }
  0xce   : > { %v432_v12 = vmul.f32 %v431_v9, %v430_v5  ;;  %v517_v13 = vmul.f32 %v1023_v6, %v431_v9  ;;  %v599_v21 = vmul.f32 %v1035_v19, %v431_v9  ;;  %v681_v30 = vmul.f32 %v1047_v27, %v431_v9  ;;  %s1975_s22 = sld [smem:[#allocation11 + $0x9]] }
  0xcf   : > { %v1906_v14 = vsel %vm439_vm0, %v429_v8, %v434_v2  ;;  %v1913_v16 = vsel %vm439_vm0, %v514_v10, %v519_v11  ;;  %v1941_v29 = vsel %vm439_vm0, %v596_v26, %v601_v24  ;;  %v678_v35 = vmul.f32 %v1046_v32, %v428_v7  ;;  %s1977_s13 = sld [smem:[#allocation11 + $0xc]] }
  0xd0   : > { %453 = vrot.lane.b32.xlu1 %v1906_v14, %s1522_s8  ;;  %444 = vrot.lane.b32.xlu0 %v1906_v14, %s1523_s9  ;;  %v437_v15 = vrot.slane %v432_v12, 7  ;;  %v522_v17 = vrot.slane %v517_v13, 7  ;;  %v604_v25 = vrot.slane %v599_v21, 7  ;;  %v686_v34 = vrot.slane %v681_v30, 7  ;;  %s1979_s15 = sld [smem:[#allocation11 + $0xf]] }
  0xd1   : > { %v1957_v37 = vsel %vm439_vm0, %v678_v35, %v683_v33  ;;  %s1981_s5 = sld [smem:[#allocation11 + $0x3]]  ;;  %v467_v38 = vstv %s1013_s2  ;;  %v463_v40 = vstv %s1969_s16 }
  0xd2   : > { %v1916_v18 = vsel %vm439_vm0, %v434_v2, %v437_v15  ;;  %v1924_v20 = vsel %vm439_vm0, %v519_v11, %v522_v17  ;;  %v1938_v28 = vsel %vm439_vm0, %v601_v24, %v604_v25  ;;  %v1954_v36 = vsel %vm439_vm0, %v683_v33, %v686_v34  ;;  %s1983_s1 = sld [smem:[#allocation11 + $0x4]] }
  0xd3   : > { %s1985_s23 = sld [smem:[#allocation11 + $0x6]]  ;;  %v468_v41 = vmul.f32 %v467_v38, %v1906_v14  ;;  %v487_v42 = vstv %s1971_s12  ;;  %v505_v43 = vstv %s1973_s18 }
  0xd4   : > { %455 = vrot.lane.b32.xlu1 %v1916_v18, %s1522_s8  ;;  %528 = vrot.lane.b32.xlu0 %v1913_v16, %s1523_s9  ;;  %s1987_s7 = sld [smem:[#allocation11 + $0x7]]  ;;  %v545_v44 = vstv %s1975_s22 }
  0xd5   : > { %s1989_s11 = sld [smem:[#allocation11 + $0xd]]  ;;  %v557_v47 = vstv %s1977_s13 }
  0xd6   : > { %s1991_s21 = sld [smem:[#allocation11 + $0xe]]  ;;  %v575_v48 = vstv %s1979_s15 }
  0xd7   : > { %s1993_s17 = sld [smem:[#allocation11 + $0x10]]  ;;  %v475_v49 = vstv %s1981_s5  ;;  %s2414_s5 = sshll.u32 %s1858_s14, 3 }
  0xd8   : > { %530 = vrot.lane.b32.xlu1 %v1924_v20, %s1523_s9  ;;  %446 = vrot.lane.b32.xlu0 %v1916_v18, %s1523_s9  ;;  %s1995_s4 = sld [smem:[#allocation11 + $0x11]]  ;;  %v481_v45 = vstv %s1983_s1 }
  0xd9   : > { %s1997_s3 = sld [smem:[#allocation11 + $0xa]]  ;;  %v2030_v51 = vmul.f32 %v481_v45, %v1916_v18  ;;  %v493_v52 = vstv %s1985_s23  ;;  %v482_v56 = vmul.f32 %v481_v45, %v1906_v14  ;;  %s415_s23 = scalar_lea.vmem [#allocation12], %s2414_s5 }
  0xda   : > { %s1999_s28 = sld [smem:[#allocation11 + $0xb]]  ;;  %v499_v46 = vstv %s1987_s7 }
  0xdb   : > { %s2001_s24 = sld [smem:[#allocation11 + $0x15]]  ;;  %v563_v50 = vstv %s1989_s11  ;;  %v2038_v55 = vmul.f32 %v499_v46, %v1916_v18  ;;  %v500_v57 = vmul.f32 %v499_v46, %v1906_v14 }
  0xdc   : > { %538 = vrot.lane.b32.xlu1 %v1924_v20, %s1522_s8  ;;  %536 = vrot.lane.b32.xlu0 %v1913_v16, %s1522_s8  ;;  %s2007_s27 = sld [smem:[#allocation11 + $0x16]]  ;;  %v2043_v58 = vmul.f32 %v563_v50, %v1924_v20  ;;  %v569_v59 = vstv %s1991_s21  ;;  %v2053_v62 = vmul.f32 %v563_v50, %v1913_v16  ;;  %s817_s21 = sshll.u32 %s415_s23, 4  ;;  %s2237_s21 = int_to_ptr.vmem [resolvable:$true] %s817_s21 }
  0xdd   : > { %s2009_s30 = sld [smem:[#allocation11 + $0x19]]  ;;  %v581_v53 = vstv %s1993_s17 }
  0xde   : > { %s2015_s2 = sld [smem:[#allocation11 + $0x13]]  ;;  %v2049_v60 = vmul.f32 %v581_v53, %v1924_v20  ;;  %v587_v61 = vstv %s1995_s4  ;;  %v582_v1 = vmul.f32 %v581_v53, %v1913_v16 }
  0xdf   : > { %s2021_s29 = sld [smem:[#allocation11 + $0x17]]  ;;  %v549_v54 = vstv %s1997_s3 }
  0xe0   : > { %612 = vrot.lane.b32.xlu1 %v1938_v28, %s1523_s9  ;;  %610 = vrot.lane.b32.xlu0 %v1941_v29, %s1523_s9  ;;  %s2027_s26 = sld [smem:[#allocation11 + $0x1a]]  ;;  %v550_v63 = vmul.f32 %v549_v54, %v1913_v16  ;;  %v553_v0 = vstv %s1999_s28 }
  0xe1   : > { %s2035_s16 = sld [smem:[#allocation11 + $0x14]]  ;;  %v639_v5 = vstv %s2001_s24 }
  0xe2   : > { %s2045_s22 = sld [smem:[#allocation11 + $0x1e]]  ;;  %v645_v2 = vstv %s2007_s27 }
  0xe3   : > { %s2055_s1 = sld [smem:[#allocation11 + $0x1f]]  ;;  %v663_v8 = vstv %s2009_s30  ;;  %v2072_v11 = vmul.f32 %v645_v2, %v1938_v28  ;;  %v2080_v16 = vmul.f32 %v645_v2, %v1941_v29 }
  0xe4   : > { %620 = vrot.lane.b32.xlu1 %v1938_v28, %s1522_s8  ;;  %618 = vrot.lane.b32.xlu0 %v1941_v29, %s1522_s8  ;;  %s2061_s7 = sld [smem:[#allocation11 + $0x21]]  ;;  %v631_v12 = vstv %s2015_s2  ;;  %v2077_v15 = vmul.f32 %v663_v8, %v1938_v28  ;;  %v2088_v20 = vmul.f32 %v663_v8, %v1941_v29  ;;  %s1348_s2 = scalar_lea.vmem %s2237_s21, 128 }
  0xe5   : > { %s2067_s11 = sld [smem:[#allocation11 + $0x1b]]  ;;  %v651_v14 = vstv %s2021_s29  ;;  %v2095_v26 = vmul.f32 %v631_v12, %v1941_v29  ;;  %p1349_p7 = scmp.ne.s32.totalorder %s2237_s21, %s1348_s2 }
  0xe6   : > { %v669_v19 = vstv %s2027_s26  ;;  %s2090_s30 = sld [smem:[#allocation11 + $0x22]]  ;;  %s1525_s26 = smov [#allocation12]  }
  0xe7   : > { %s2097_s27 = sld [smem:[#allocation11 + $0x20]]  ;;  %v635_v34 = vstv %s2035_s16  ;;  %s1352_s16 = sshll.u32 %s1525_s26, 4  ;;  %s1353_s16 = int_to_ptr.vmem [resolvable:$false] %s1352_s16 }
  0xe8   : > { %694 = vrot.lane.b32.xlu1 %v1954_v36, %s1523_s9  ;;  %692 = vrot.lane.b32.xlu0 %v1957_v37, %s1523_s9  ;;  %s2005_s9 = sld [smem:[#allocation11 + $0x12]]  ;;  %v721_v50 = vstv %s2045_s22  ;;  %s1354_s22 = scalar_lea.vmem %s1353_s16, 256 }
  0xe9   : > { %s2102_s17 = sld [smem:[#allocation11 + $0x1c]]  ;;  %v727_v35 = vstv %s2055_s1  ;;  %p1355_p4 = scmp.lt.s32.totalorder %s2237_s21, %s1353_s16 }
  0xea   : > { %v739_v53 = vstv %s2061_s7  ;;  %s2113_s3 = sld [smem:[#allocation11 + $0x23]]  ;;  %p1356_p12 = scmp.lt.s32.totalorder %s1354_s22, %s1348_s2 }
  0xeb   : > { %v709_v54 = vstv %s2067_s11  ;;  %s2180_s12 = sld [smem:[#allocation11 + $0x1d]] }
  0xec   : > { %702 = vrot.lane.b32.xlu1 %v1954_v36, %s1522_s8  ;;  %700 = vrot.lane.b32.xlu0 %v1957_v37, %s1522_s8  ;;  %s2003_s8 = sld [smem:[#allocation11 + $0x18]]  ;;  %p1357_p9 = por %p1356_p12, %p1355_p4 }
  0xed   : > { %s2412_s29 = sld [smem:[#allocation24_spill]] }
  0xee   : > { %v627_v7 = vstv %s2005_s9  ;;  %s2413_s13 = sld [smem:[#allocation33_spill]] }
  0xef   : > { %s2415_s24 = sld [smem:[#allocation41_spill]] }
  0xf2   : > { %v657_v6 = vstv %s2003_s8 }
  0xf4   : > { %p2417_p0 = scmp.ne.s32.totalorder %s2413_s13, 0 }
  0xf5   : > { %s2416_s8 = smov %s2415_s24 }
  0xf6   : > { %p1350_p3 = pnand %p1349_p7, %p2417_p0 }
  0xf8   : > { %p1351_p6 = pneg %p1350_p3 }
  0xfa   : > { %p1358_p11 = pnand %p1357_p9, %p1351_p6 }
 0x142   : > { %v454_v3 = vpop.permute.xlu1 %453  ;;  %v445_v4 = vpop.permute.xlu0 %444 }
 0x143   : > { %v460_v9 = vsel %vm459_vm1, %v454_v3, 0.0  ;;  %v451_v10 = vsel %vm450_vm2, 0.0, %v445_v4 }
 0x144   : > { %v464_v13 = vmul.f32 %v463_v40, %v451_v10  ;;  %v476_v17 = vmul.f32 %v475_v49, %v451_v10  ;;  %v494_v18 = vmul.f32 %v493_v52, %v451_v10  ;;  %v472_v21 = vmul.f32 %v471_v39, %v460_v9 }
 0x145   : > { %v488_v23 = vmul.f32 %v487_v42, %v460_v9  ;;  %v506_v27 = vmul.f32 %v505_v43, %v460_v9  ;;  %v2123_v9 = vmul.f32 %v727_v35, %v1954_v36 }
 0x146   : > { %v469_v22 = vadd.f32 %v468_v41, %v464_v13  ;;  %v456_v24 = vpop.permute.xlu1 %455  ;;  %v529_v25 = vpop.permute.xlu0 %528  ;;  %v484_v30 = vadd.f32 %v482_v56, %v476_v17  ;;  %v502_v31 = vadd.f32 %v500_v57, %v494_v18  ;;  %v745_v17 = vstv %s2090_s30 }
 0x147   : > { %v534_v28 = vsel %vm450_vm2, 0.0, %v529_v25 }
 0x148   : > { %v473_v32 = vadd.f32 %v472_v21, %v469_v22  ;;  %v546_v33 = vmul.f32 %v545_v44, %v534_v28  ;;  %v558_v29 = vmul.f32 %v557_v47, %v534_v28  ;;  %v576_v38 = vmul.f32 %v575_v48, %v534_v28 }
 0x149   : > { %v490_v39 = vadd.f32 %v488_v23, %v484_v30  ;;  %v508_v40 = vadd.f32 %v506_v27, %v502_v31  ;;  %v461_v44 = vsel %vm459_vm1, %v456_v24, 0.0  ;;  %v2149_v28 = vmul.f32 %v727_v35, %v1957_v37 }
 0x14a   : > { %v547_v41 = vadd.f32 %v546_v33, %v473_v32  ;;  %v531_v45 = vpop.permute.xlu1 %530  ;;  %v447_v46 = vpop.permute.xlu0 %446  ;;  %v489_v18 = vmul.f32 %v487_v42, %v461_v44  ;;  %v507_v21 = vmul.f32 %v505_v43, %v461_v44  ;;  %v751_v33 = vstv %s2113_s3 }
 0x14b   : > { %v452_v56 = vsel %vm450_vm2, 0.0, %v447_v46  ;;  %v560_v57 = vadd.f32 %v558_v29, %v490_v39  ;;  %v578_v2 = vadd.f32 %v576_v38, %v508_v40  ;;  %v535_v3 = vsel %vm450_vm2, 0.0, %v531_v45 }
 0x14c   : > { %v477_v4 = vmul.f32 %v475_v49, %v452_v56  ;;  %v495_v8 = vmul.f32 %v493_v52, %v452_v56  ;;  %v551_v10 = vadd.f32 %v550_v63, %v547_v41  ;;  %v559_v24 = vmul.f32 %v557_v47, %v535_v3 }
 0x14d   : > { %v566_v12 = vadd.f32 %v2053_v62, %v560_v57  ;;  %v584_v13 = vadd.f32 %v582_v1, %v578_v2  ;;  %v733_v62 = vstv %s2097_s27  ;;  %v713_v1 = vstv %s2102_s17 }
 0x14e   : > { %v485_v49 = vadd.f32 %v2030_v51, %v477_v4  ;;  %v503_v22 = vadd.f32 %v2038_v55, %v495_v8  ;;  %v539_v52 = vpop.permute.xlu1 %538  ;;  %v537_v23 = vpop.permute.xlu0 %536  ;;  %v577_v25 = vmul.f32 %v575_v48, %v535_v3  ;;  %v2146_v47 = vmul.f32 %v745_v17, %v1954_v36 }
 0x14f   : > { %v542_v63 = vsel %vm459_vm1, %v537_v23, 0.0  ;;  %v543_v43 = vsel %vm459_vm1, %v539_v52, 0.0  ;;  %v2153_v29 = vmul.f32 %v745_v17, %v1957_v37  ;;  %v2161_v35 = vmul.f32 %v713_v1, %v1957_v37 }
 0x150   : > { %v491_v42 = vadd.f32 %v489_v18, %v485_v49  ;;  %v509_v27 = vadd.f32 %v507_v21, %v503_v22  ;;  %v554_v51 = vmul.f32 %v553_v0, %v542_v63  ;;  %v570_v55 = vmul.f32 %v569_v59, %v542_v63 }
 0x151   : > { %v571_v0 = vmul.f32 %v569_v59, %v543_v43  ;;  %v588_v36 = vmul.f32 %v587_v61, %v542_v63  ;;  %v589_v41 = vmul.f32 %v587_v61, %v543_v43 }
 0x152   : > { %v561_v30 = vadd.f32 %v559_v24, %v491_v42  ;;  %v579_v31 = vadd.f32 %v577_v25, %v509_v27  ;;  %v613_v48 = vpop.permute.xlu1 %612  ;;  %v611_v32 = vpop.permute.xlu0 %610  ;;  %v555_v45 = vadd.f32 %v554_v51, %v551_v10  ;;  %v572_v46 = vadd.f32 %v570_v55, %v566_v12 }
 0x153   : > { %v617_v38 = vsel %vm450_vm2, 0.0, %v613_v48  ;;  %v616_v56 = vsel %vm450_vm2, 0.0, %v611_v32  ;;  %v590_v61 = vadd.f32 %v588_v36, %v584_v13  ;;  %v717_v36 = vstv %s2180_s12 }
 0x154   : > { %v567_v39 = vadd.f32 %v2043_v58, %v561_v30  ;;  %v585_v40 = vadd.f32 %v2049_v60, %v579_v31  ;;  %v641_v44 = vmul.f32 %v639_v5, %v617_v38  ;;  %v659_v59 = vmul.f32 %v657_v6, %v617_v38 }
 0x155   : > { %v628_v37 = vmul.f32 %v627_v7, %v616_v56  ;;  %v640_v58 = vmul.f32 %v639_v5, %v616_v56  ;;  %v658_v4 = vmul.f32 %v657_v6, %v616_v56 }
 0x156   : > { %v573_v57 = vadd.f32 %v571_v0, %v567_v39  ;;  %v591_v2 = vadd.f32 %v589_v41, %v585_v40  ;;  %v621_v60 = vpop.permute.xlu1 %620  ;;  %v619_v3 = vpop.permute.xlu0 %618 }
 0x157   : > { %v625_v8 = vsel %vm459_vm1, %v621_v60, 0.0  ;;  %v624_v10 = vsel %vm459_vm1, %v619_v3, 0.0  ;;  %v629_v18 = vadd.f32 %v628_v37, %v555_v45  ;;  %v642_v7 = vadd.f32 %v640_v58, %v572_v46 }
 0x158   : > { %v643_v12 = vadd.f32 %v641_v44, %v573_v57  ;;  %v661_v17 = vadd.f32 %v659_v59, %v591_v2  ;;  %v660_v21 = vadd.f32 %v658_v4, %v590_v61  ;;  %v653_v5 = vmul.f32 %v651_v14, %v625_v8 }
 0x159   : > { %v671_v13 = vmul.f32 %v669_v19, %v625_v8  ;;  %v636_v6 = vmul.f32 %v635_v34, %v624_v10  ;;  %v633_v52 = vadd.f32 %v2095_v26, %v629_v18  ;;  %v648_v23 = vadd.f32 %v2080_v16, %v642_v7 }
 0x15a   : > { %v649_v49 = vadd.f32 %v2072_v11, %v643_v12  ;;  %v667_v22 = vadd.f32 %v2077_v15, %v661_v17  ;;  %v695_v24 = vpop.permute.xlu1 %694  ;;  %v693_v63 = vpop.permute.xlu0 %692  ;;  %v652_v1 = vmul.f32 %v651_v14, %v624_v10  ;;  %v666_v25 = vadd.f32 %v2088_v20, %v660_v21 }
 0x15b   : > { %v670_v34 = vmul.f32 %v669_v19, %v624_v10  ;;  %v699_v11 = vsel %vm450_vm2, 0.0, %v695_v24  ;;  %v637_v27 = vadd.f32 %v636_v6, %v633_v52  ;;  %v698_v55 = vsel %vm450_vm2, 0.0, %v693_v63  ;;  %v772_v10 = vld [vmem:[%s1887_s10] sm:$0xff]  ;;  %s1059_s10 = sshll.u32 %s2412_s29, 1 }
 0x15c   : > { %v655_v42 = vadd.f32 %v653_v5, %v649_v49  ;;  %v673_v15 = vadd.f32 %v671_v13, %v667_v22  ;;  %v723_v26 = vmul.f32 %v721_v50, %v699_v11  ;;  %v654_v16 = vadd.f32 %v652_v1, %v648_v23  ;;  %s813_s18 = sadd.s32 %s2411_s0, %s1059_s10  ;;  %s802_s0 = scalar_lea.sflag [#allocation4], %s1858_s14 }
 0x15d   : > { %v672_v43 = vadd.f32 %v670_v34, %v666_v25  ;;  %v741_v51 = vmul.f32 %v739_v53, %v699_v11  ;;  %v710_v20 = vmul.f32 %v709_v54, %v698_v55  ;;  %v722_v19 = vmul.f32 %v721_v50, %v698_v55  ;;  %s1060_s15 = sshll.u32 %s813_s18, 7 }
 0x15e   : > { %v725_v14 = vadd.f32 %v723_v26, %v655_v42  ;;  %v740_v30 = vmul.f32 %v739_v53, %v698_v55  ;;  %v703_v31 = vpop.permute.xlu1 %702  ;;  %v701_v48 = vpop.permute.xlu0 %700  ;;  %s2235_s9 = scalar_lea.hbm %s2415_s24, %s1060_s15  ;;  %v1524_v11 = vmov 0.0  }
 0x15f   : > { %v743_v32 = vadd.f32 %v741_v51, %v673_v15  ;;  %v707_v0 = vsel %vm459_vm1, %v703_v31, 0.0  ;;  %v706_v38 = vsel %vm459_vm1, %v701_v48, 0.0  ;;  %v711_v39 = vadd.f32 %v710_v20, %v637_v27 }
 0x160   : > { %v724_v40 = vadd.f32 %v722_v19, %v654_v16  ;;  %v742_v41 = vadd.f32 %v740_v30, %v672_v43  ;;  %v731_v45 = vadd.f32 %v2123_v9, %v725_v14  ;;  %v735_v54 = vmul.f32 %v733_v62, %v707_v0 }
 0x161   : > { %v749_v50 = vadd.f32 %v2146_v47, %v743_v32  ;;  %v753_v53 = vmul.f32 %v751_v33, %v707_v0  ;;  %v715_v46 = vadd.f32 %v2161_v35, %v711_v39  ;;  %v734_v59 = vmul.f32 %v733_v62, %v706_v38 }
 0x162   : > { %v730_v44 = vadd.f32 %v2149_v28, %v724_v40  ;;  %v748_v56 = vadd.f32 %v2153_v29, %v742_v41  ;;  %v737_v57 = vadd.f32 %v735_v54, %v731_v45  ;;  %v718_v37 = vmul.f32 %v717_v36, %v706_v38 }
 0x163   : > { %v755_v2 = vadd.f32 %v753_v53, %v749_v50  ;;  %v752_v9 = vmul.f32 %v751_v33, %v706_v38  ;;  %v774_v33 = vlaneseq }
 0x164   : > { %v736_v58 = vadd.f32 %v734_v59, %v730_v44  ;;  %v760_v60 = vrot.slane %v737_v57, 1  ;;  %v719_v35 = vadd.f32 %v718_v37, %v715_v46 }
 0x165   : > { %v768_v3 = vrot.slane %v755_v2, 2  ;;  %v754_v47 = vadd.f32 %v752_v9, %v748_v56  ;;  %v775_v18 = vand.u32 127, %v774_v33 }
 0x166   : > { %v759_v61 = vrot.slane %v736_v58, 1 }
 0x167   : > { %v767_v4 = vrot.slane %v754_v47, 2 }
 0x168   : > { %v761_v28 = vsel %vm758_vm3, %v759_v61, %v760_v60 }
 0x169   : > { %v763_v8 = vadd.f32 %v761_v28, %v719_v35  ;;  %v769_v62 = vsel %vm766_vm4, %v767_v4, %v768_v3 }
 0x16b   : > { %v771_v29 = vadd.f32 %v769_v62, %v763_v8 }
 0x16d   : > { %v773_v12 = vadd.f32 %v772_v10, %v771_v29 }
 0x16f   : > { %v777_v17 = vsel %vm776_vm5, %v773_v12, -inf }
 0x170   : > { %778 = vmax.xlane.f32.xlu0 %v777_v17 }
 0x1f9   : > { %v779_v7 = vpop.xlane.xlu0 %778 }
 0x1fa   : > { %vm780_vm6 = vcmp.eq.f32.partialorder %v773_v12, %v779_v7 }
 0x1fb   : > { %v781_v21 = vsel %vm780_vm6, %v775_v18, 16 }
 0x1fc   : > { %v782_v5 = vsel %vm776_vm5, %v781_v21, 2147483647 }
 0x1fd   : > { %v784_v13 = vshra.s32 %v782_v5, 16  ;;  %v783_v49 = vand.u32 65535, %v782_v5 }
 0x1ff   : > { %v786_v6 = vcvt.s32.f32 %v784_v13  ;;  %v785_v52 = vcvt.s32.f32 %v783_v49 }
 0x201   : > { %787 = vmin.xlane.f32.xlu1 %v786_v6 }
 0x28a   : > { %v788_v22 = vpop.xlane.xlu1 %787 }
 0x28b   : > { %vm789_vm7 = vcmp.eq.f32.partialorder %v786_v6, %v788_v22  ;;  %v794_v24 = vcvt.f32.s32 %v788_v22 }
 0x28c   : > { %v790_v23 = vsel %vm789_vm7, %v785_v52, inf }
 0x28d   : > { %791 = vmin.xlane.f32.xlu0 %v790_v23  ;;  %v795_v1 = vshll.u32 %v794_v24, 16 }
 0x316   : > { %v792_v63 = vpop.xlane.xlu0 %791 }
 0x317   : > { %v793_v25 = vcvt.f32.s32 %v792_v63 }
 0x319   : > { %v796_v34 = vadd.s32 %v795_v1, %v793_v25 }
 0x31b   : > { %vm797_vm8 = vcmp.eq.s32.totalorder %v775_v18, %v796_v34 }
 0x31c   : > { %v1057_v42 = vsel %vm797_vm8, 1.0, %v1524_v11 }
 0x31d   : > { %800 = vst.msk [vmem:[%s415_s23] sm:$0xff] %vm776_vm5, %v1057_v42 }
 0x31e   : > { %1361 = shalt.err (!%p1358_p11)
}
 0x31f   : > { %s1362_s1 = scalar_lea.hbm %s2235_s9, 128  ;;  %s1366_s11 = scalar_lea.hbm %s2416_s8, 512 }
 0x320   : > { %p1363_p10 = scmp.ne.s32.totalorder %s2235_s9, %s1362_s1  ;;  %p1367_p13 = scmp.lt.s32.totalorder %s2235_s9, %s2416_s8 }
 0x321   : > { %p1368_p5 = scmp.lt.s32.totalorder %s1366_s11, %s1362_s1 }
 0x322   : > { %p1364_p8 = pnand %p1363_p10, %p2417_p0 }
 0x323   : > { %p1369_p1 = por %p1368_p5, %p1367_p13 }
 0x324   : > { %p1365_p2 = pneg %p1364_p8 }
 0x326   : > { %p1370_p7 = pnand %p1369_p1, %p1365_p2 }
 0x328   : > { %1373 = shalt.err (!%p1370_p7)
}
 0x329   : > { %1075 = dma.vmem_to_hbm [thread:$0]  (%p2417_p0), %s2237_s21, 128, %s2235_s9, %s802_s0  }
 0x32a PF: > { %s2418_s17 = sld [smem:[#allocation21_spill]]  ;;  %p1101_p3 = scmp.ge.s32.totalorder %s1512_s6, 2 }
 0x32b   : > { %s2419_s3 = sld [smem:[#allocation34_spill]] }
 0x330   : > { %s829_s12 = sand.u32 1, %s2418_s17  }
 0x331   : > { %p2420_p6 = scmp.ne.s32.totalorder %s2419_s3, 0  ;;  %s830_s29 = scalar_lea.sflag [#allocation4], %s829_s12 }
 0x333   : > { %p1095_p4 = pnand %p1101_p3, %p2420_p6 }
 0x335   : > { %p1096_p12 = pneg %p1095_p4 }
 0x337   : > { %1451 = dma.done.wait (%p1096_p12), %s830_s29, 128  }
 0x338   : > { %1453 = vsyncadd (%p1096_p12), %s830_s29, 4294967168  ;;  %s28_s6 = sadd.s32 1, %s1512_s6   ;;  %s2422_s13 = sld [smem:[#allocation35_spill]] }
 0x339   : > { %p2266_p9 = scmp.ge.s32.totalorder %s28_s6, 6   ;;  %s2423_s21 = sld [smem:[#allocation19_spill]] }
 0x33a   : > { %s2424_s22 = sld [smem:[#allocation20_spill]]  ;;  %s2432_s18 = smov %s1464_s19 }
 0x33b   : > { %s2425_s23 = sld [smem:[#allocation29_spill]]  ;;  %s2433_s19 = smov %s1468_s20 }
 0x33c   : > { %s2426_s15 = sld [smem:[#allocation22_spill]]  ;;  %s2435_s24 = smov %s1488_s25 }
 0x33d   : > { %s2427_s26 = sld [smem:[#allocation30_spill]] }
 0x33e   : > { %s2428_s27 = sld [smem:[#allocation25_spill]]  ;;  %s2434_s20 = smov %s2422_s13 }
 0x33f   : > { %s2429_s28 = sld [smem:[#allocation26_spill]]  ;;  %27 = sbr.rel (!%p2266_p9) target bundleno = 22 (0x16), region = 136 }
 0x340   : > { %s2430_s29 = sld [smem:[#allocation27_spill]] }
 0x341   : > { %s2431_s30 = sld [smem:[#allocation28_spill]] }
 0x342   : > { %s2436_s25 = smov %s2426_s15 }
 0x344   :  { %835 = vsyncpa [#allocation3], 1 }
 0x345   :  { %837 = vsyncpa [#allocation3 + $0x1], 1 }
 0x346   :  { %838 = vsyncpa [#allocation7], 1 }
 0x347   :  { %840 = vsyncpa [#allocation7 + $0x1], 1 }
 0x348   :  { %841 = vsyncpa [#allocation10], 1 }
 0x349   :  { %843 = vsyncpa [#allocation10 + $0x1], 1 }
 0x34a   :  { %844 = vsyncpa [#allocation4], 1 }
 0x34b   :  { %846 = vsyncpa [#allocation4 + $0x1], 1 }
 0x34c   :  { %847 = vsyncpa [#allocation5], 1 }
 0x34d   :  { %849 = vsyncpa [#allocation5 + $0x1], 1 }

</bundles_post_ra>
